<compile_context>
chip_gen: v6e
topology: v6e:2x2x1
jax: 0.10.0
libtpu: 0.0.40
codegen_flags: <defaults>
</compile_context>

<pallas_src>
import functools
import math

import jax
import jax.numpy as jnp
from jax.experimental import pallas as pl
from jax.experimental.pallas import tpu as pltpu


def _round_up(a: int, b: int) -> int:
    return ((a + b - 1) // b) * b


def _sa_kernel(x_ref, wqk_ref, bqk_ref, out_ref, attn_ref, *,
               window, elem, embd, compute_dtype):
    # x_ref:    (Bp, W*E)        lane-dense packed patches (row b = one patch)
    # wqk_ref:  (W*E, 2*W*D)     block-diagonal fused [Wq^T | Wk^T] (Q half pre-scaled)
    # bqk_ref:  (1, 2*W*D)       fused [bq | bk] (Q half pre-scaled)
    # out_ref:  (Bp, W*E)        lane-dense x + softmax(QK^T/sqrt(E)) @ x
    # attn_ref: (Bp, W*W)        lane-dense attention matrices (col = q*W + k)
    W, E, D = window, elem, embd

    x2 = x_ref[...]                                             # (Bp, W*E) f32

    # Fused block-diagonal Q|K projection: ONE MXU matmul per grid step.
    qk = jnp.dot(x2.astype(compute_dtype),
                 wqk_ref[...].astype(compute_dtype),
                 preferred_element_type=jnp.float32)            # (Bp, 2*W*D) f32
    qk = jnp.maximum(qk + bqk_ref[...], 0.0)                    # bias + ReLU

    # Static lane slices of the packed projections / input (no reshapes, no
    # per-patch MXU work below this point -- everything is VPU/XLU with the
    # patch axis kept as the big sublane axis).
    q_blk = [qk[:, q * D:(q + 1) * D] for q in range(W)]               # (Bp, D)
    k_blk = [qk[:, W * D + k * D:W * D + (k + 1) * D] for k in range(W)]
    x_blk = [x2[:, w * E:(w + 1) * E] for w in range(W)]               # (Bp, E)

    out_cols = []
    attn_cols = []
    for q in range(W):
        # Scores of query row q vs. all W key rows: VPU multiply + lane reduce.
        # (The 1/sqrt(E) scale is already folded into q_blk via the weights.)
        s = jnp.concatenate(
            [jnp.sum(q_blk[q] * k_blk[k], axis=-1, keepdims=True)      # (Bp, 1)
             for k in range(W)],
            axis=-1)                                                   # (Bp, W)

        # Numerically stable softmax over the key axis; EXACT division so the
        # returned attention rows sum to 1 (matches torch.softmax).
        s = s - jnp.max(s, axis=-1, keepdims=True)
        e = jnp.exp(s)
        p = e * (1.0 / jnp.sum(e, axis=-1, keepdims=True))             # (Bp, W)
        attn_cols.append(p)

        # new_values row q = sum_k p[:, k] * x_k  (VPU broadcast-MAC), residual.
        nv = p[:, 0:1] * x_blk[0]
        for k in range(1, W):
            nv = nv + p[:, k:k + 1] * x_blk[k]                         # (Bp, E)
        out_cols.append(x_blk[q] + nv)

    # Single lane-dense full-width stores (no masked per-row stores).
    out_ref[...] = jnp.concatenate(out_cols, axis=-1)                  # (Bp, W*E)
    attn_ref[...] = jnp.concatenate(attn_cols, axis=-1)                # (Bp, W*W)


def _patched_sa_pallas(x_packed, wqk_bd, bqk_bd, *, window, elem, embd,
                       block_patches, compute_dtype):
    """x_packed: (NP_pad, W*E) lane-dense, NP_pad % block_patches == 0.

    Returns (out (NP_pad, W*E), attn (NP_pad, W*W)), both lane-dense packed.
    """
    NP_pad, WE = x_packed.shape
    W, E, D = window, elem, embd
    Bp = block_patches
    G = NP_pad // Bp

    out_shape = (
        jax.ShapeDtypeStruct((NP_pad, W * E), jnp.float32),
        jax.ShapeDtypeStruct((NP_pad, W * W), jnp.float32),
    )

    grid_spec = pltpu.PrefetchScalarGridSpec(
        num_scalar_prefetch=0,
        grid=(G,),
        in_specs=[
            pl.BlockSpec((Bp, W * E), lambda i: (i, 0)),          # packed patches
            pl.BlockSpec((W * E, 2 * W * D), lambda i: (0, 0)),   # block-diag [Wq|Wk]
            pl.BlockSpec((1, 2 * W * D), lambda i: (0, 0)),       # fused bias
        ],
        out_specs=[
            pl.BlockSpec((Bp, W * E), lambda i: (i, 0)),          # lane-dense out
            pl.BlockSpec((Bp, W * W), lambda i: (i, 0)),          # attn (full minor dim)
        ],
    )

    flops = (2 * NP_pad * (W * E) * (2 * W * D)     # fused projection
             + 2 * NP_pad * W * W * D               # scores
             + 2 * NP_pad * W * W * E)              # attn @ x
    bytes_accessed = 4 * (NP_pad * W * E            # x in (dense, lane-packed)
                          + (W * E) * (2 * W * D) + 2 * W * D
                          + NP_pad * W * E          # out
                          + NP_pad * W * W)         # attn
    cost = pl.CostEstimate(flops=flops,
                           transcendentals=NP_pad * W * W,
                           bytes_accessed=bytes_accessed)

    kernel = functools.partial(_sa_kernel, window=W, elem=E, embd=D,
                               compute_dtype=compute_dtype)
    return pl.pallas_call(
        kernel,
        out_shape=out_shape,
        grid_spec=grid_spec,
        cost_estimate=cost,
        compiler_params=pltpu.CompilerParams(
            dimension_semantics=("parallel",)),
    )(x_packed, wqk_bd, bqk_bd)


def patched_self_attention(x, wq, bq, wk, bk, window_size, *,
                           block_patches=512, compute_dtype=jnp.float32):
    """Forward pass of PatchedSelfAttentionLayer.

    x: (N, seq, elem) f32; wq, wk: (embd, elem) (nn.Linear layout); bq, bk: (embd,)
    Returns (out (N, seq, elem), attn (N, seq, window_size)).

    compute_dtype only affects the fused projection matmul operands (f32
    accumulation is kept); pass jnp.bfloat16 on v6e/v7x if a ~1e-2 tolerance
    is acceptable.  Default f32 is bit-safe on every TPU generation.
    """
    N, seq, E = x.shape
    D = wq.shape[0]
    W = window_size
    patches_num = seq // W
    P = patches_num + (1 if seq % W != 0 else 0)
    pad_seq = P * W - seq

    # Zero-pad the tail to a full window (same semantics as the PyTorch concat),
    # then pack each patch lane-dense: row = patch, lanes = W*E (=128 for 8x16).
    xp = jnp.pad(x, ((0, 0), (0, pad_seq), (0, 0))) if pad_seq else x
    x_packed = xp.reshape(N * P, W * E).astype(jnp.float32)

    NP = N * P
    # Block size: large (>=512 hits ~85% of HBM BW in tile sweeps), multiple of 8
    # so the (Bp, 128)/(Bp, W*W) BlockSpecs satisfy sublane divisibility.
    Bp = min(block_patches, _round_up(NP, 8))
    Bp = max(8, (Bp // 8) * 8)
    # v7x-aware clamp: if one block would swallow a large input, split it so the
    # single "parallel" grid axis can shard across both TensorCores.
    if NP >= 1024 and NP <= Bp:
        Bp = _round_up(pl.cdiv(NP, 2), 8)
    NP_pad = _round_up(NP, Bp)
    if NP_pad != NP:
        x_packed = jnp.pad(x_packed, ((0, NP_pad - NP), (0, 0)))

    # Fused block-diagonal projection parameters.  The 1/sqrt(E) score scale is
    # folded into the Q half (ReLU is positively homogeneous, scale > 0), so the
    # kernel never multiplies scores by a scalar.
    scale = 1.0 / math.sqrt(float(E))
    eye_w = jnp.eye(W, dtype=jnp.float32)
    wq_bd = jnp.kron(eye_w, (wq * scale).T.astype(jnp.float32))   # (W*E, W*D)
    wk_bd = jnp.kron(eye_w, wk.T.astype(jnp.float32))             # (W*E, W*D)
    wqk_bd = jnp.concatenate([wq_bd, wk_bd], axis=1)              # (W*E, 2*W*D)
    bqk_bd = jnp.concatenate([jnp.tile(bq.astype(jnp.float32) * scale, W),
                              jnp.tile(bk.astype(jnp.float32), W)]).reshape(1, -1)

    out_packed, attn_packed = _patched_sa_pallas(
        x_packed, wqk_bd, bqk_bd, window=W, elem=E, embd=D,
        block_patches=Bp, compute_dtype=compute_dtype)

    out = out_packed[:NP].reshape(N, P * W, E)[:, :seq, :]
    attn = attn_packed[:NP].reshape(N, P * W, W)[:, :seq, :]
    return out, attn


def _reference(x, wq, bq, wk, bk, window_size):
    """Pure-JAX reference mirroring the PyTorch module exactly."""
    N, seq, E = x.shape
    W = window_size
    patches_num = seq // W
    rem = seq - patches_num * W
    xp = x[:, : patches_num * W, :].reshape(N, patches_num, W, E)
    if rem != 0:
        pad = jnp.zeros((N, 1, W, E), dtype=x.dtype)
        pad = pad.at[:, 0, :rem, :].set(x[:, patches_num * W:, :])
        xp = jnp.concatenate([xp, pad], axis=1)
    hi = jax.lax.Precision.HIGHEST
    Q = jax.nn.relu(jnp.einsum("npwe,de->npwd", xp, wq, precision=hi) + bq)
    K = jax.nn.relu(jnp.einsum("npwe,de->npwd", xp, wk, precision=hi) + bk)
    att = jnp.einsum("npqd,npkd->npqk", Q, K, precision=hi) / math.sqrt(E)
    att = jax.nn.softmax(att, axis=-1)
    new_values = jnp.einsum("npqk,npke->npqe", att, xp, precision=hi)
    out = xp + new_values
    P = xp.shape[1]
    out = out.reshape(N, P * W, E)[:, :seq, :]
    att = att.reshape(N, P * W, W)[:, :seq, :W]
    return out, att


if __name__ == "__main__":
    # Small shapes consistent with the module's forward:
    #   x: (N=2, seq=20, elem=16), window_size=8 -> 2 full patches + 1 padded tail
    N, seq, elem_size = 2, 20, 16
    embd_size = 32
    window_size = 8

    key = jax.random.PRNGKey(0)
    kx, kwq, kbq, kwk, kbk = jax.random.split(key, 5)

    x = jax.random.normal(kx, (N, seq, elem_size), dtype=jnp.float32)

    # Deterministic nn.Linear-style init (uniform in +-1/sqrt(in_features)).
    bound = 1.0 / math.sqrt(elem_size)
    wq = jax.random.uniform(kwq, (embd_size, elem_size), jnp.float32, -bound, bound)
    bq = jax.random.uniform(kbq, (embd_size,), jnp.float32, -bound, bound)
    wk = jax.random.uniform(kwk, (embd_size, elem_size), jnp.float32, -bound, bound)
    bk = jax.random.uniform(kbk, (embd_size,), jnp.float32, -bound, bound)

    out, attn = patched_self_attention(x, wq, bq, wk, bk, window_size)
    out, attn = jax.block_until_ready((out, attn))

    ref_out, ref_attn = _reference(x, wq, bq, wk, bk, window_size)
    assert out.shape == (N, seq, elem_size)
    assert attn.shape == (N, seq, window_size)
    # Everything is f32 with f32 accumulation and exact softmax division; the
    # only differences vs. the reference are matmul summation order.
    assert jnp.allclose(out, ref_out, atol=2e-3, rtol=2e-3)
    assert jnp.allclose(attn, ref_attn, atol=2e-3, rtol=2e-3)

    print("KERNEL_OK")
</pallas_src>

<mosaic_0001>
module attributes {stable_mosaic.version = 11 : i64} {
  func.func @_sa_kernel(%arg0: i32, %arg1: memref<8x128xf32, #tpu.memory_space<vmem>>, %arg2: memref<128x512xf32, #tpu.memory_space<vmem>>, %arg3: memref<1x512xf32, #tpu.memory_space<vmem>>, %arg4: memref<8x128xf32, #tpu.memory_space<vmem>>, %arg5: memref<8x64xf32, #tpu.memory_space<vmem>>) attributes {dimension_semantics = [#tpu.dimension_semantics<parallel>], iteration_bounds = array<i64: 1>, scalar_prefetch = 0 : i64, scratch_operands = 0 : i64, tpu.core_type = #tpu.core_type<tc>, window_params = [{transform_indices = @transform_0, window_bounds = array<i64: 8, 128>}, {pipeline_mode = #tpu.pipeline_mode<synchronous>, transform_indices = @transform_1, window_bounds = array<i64: 128, 512>}, {pipeline_mode = #tpu.pipeline_mode<synchronous>, transform_indices = @transform_2, window_bounds = array<i64: 1, 512>}, {transform_indices = @transform_3, window_bounds = array<i64: 8, 128>}, {transform_indices = @transform_4, window_bounds = array<i64: 8, 64>}]} {
    %c0 = arith.constant 0 : index
    %c0_0 = arith.constant 0 : index
    %0 = vector.load %arg1[%c0, %c0_0] : memref<8x128xf32, #tpu.memory_space<vmem>>, vector<8x128xf32>
    %c0_1 = arith.constant 0 : index
    %c0_2 = arith.constant 0 : index
    %1 = vector.load %arg2[%c0_1, %c0_2] : memref<128x512xf32, #tpu.memory_space<vmem>>, vector<128x512xf32>
    %cst = arith.constant dense<0.000000e+00> : vector<8x512xf32>
    %2 = tpu.matmul %0, %1, %cst {dimension_numbers = #tpu.dot_dimension_numbers<[1], [0], [0], [1], [0, 0, 1, 1], [], []>} : vector<8x128xf32>, vector<128x512xf32>, vector<8x512xf32> -> vector<8x512xf32>
    %c0_3 = arith.constant 0 : index
    %c0_4 = arith.constant 0 : index
    %3 = vector.load %arg3[%c0_3, %c0_4] : memref<1x512xf32, #tpu.memory_space<vmem>>, vector<1x512xf32>
    %4 = vector.broadcast %3 : vector<1x512xf32> to vector<8x512xf32>
    %5 = arith.addf %2, %4 : vector<8x512xf32>
    %cst_5 = arith.constant 0.000000e+00 : f32
    %6 = vector.broadcast %cst_5 : f32 to vector<8x512xf32>
    %7 = arith.maximumf %5, %6 : vector<8x512xf32>
    %8 = vector.extract_strided_slice %7 {offsets = [0, 0], sizes = [8, 32], strides = [1, 1]} : vector<8x512xf32> to vector<8x32xf32>
    %9 = vector.extract_strided_slice %7 {offsets = [0, 32], sizes = [8, 32], strides = [1, 1]} : vector<8x512xf32> to vector<8x32xf32>
    %10 = vector.extract_strided_slice %7 {offsets = [0, 64], sizes = [8, 32], strides = [1, 1]} : vector<8x512xf32> to vector<8x32xf32>
    %11 = vector.extract_strided_slice %7 {offsets = [0, 96], sizes = [8, 32], strides = [1, 1]} : vector<8x512xf32> to vector<8x32xf32>
    %12 = vector.extract_strided_slice %7 {offsets = [0, 128], sizes = [8, 32], strides = [1, 1]} : vector<8x512xf32> to vector<8x32xf32>
    %13 = vector.extract_strided_slice %7 {offsets = [0, 160], sizes = [8, 32], strides = [1, 1]} : vector<8x512xf32> to vector<8x32xf32>
    %14 = vector.extract_strided_slice %7 {offsets = [0, 192], sizes = [8, 32], strides = [1, 1]} : vector<8x512xf32> to vector<8x32xf32>
    %15 = vector.extract_strided_slice %7 {offsets = [0, 224], sizes = [8, 32], strides = [1, 1]} : vector<8x512xf32> to vector<8x32xf32>
    %16 = vector.extract_strided_slice %7 {offsets = [0, 256], sizes = [8, 32], strides = [1, 1]} : vector<8x512xf32> to vector<8x32xf32>
    %17 = vector.extract_strided_slice %7 {offsets = [0, 288], sizes = [8, 32], strides = [1, 1]} : vector<8x512xf32> to vector<8x32xf32>
    %18 = vector.extract_strided_slice %7 {offsets = [0, 320], sizes = [8, 32], strides = [1, 1]} : vector<8x512xf32> to vector<8x32xf32>
    %19 = vector.extract_strided_slice %7 {offsets = [0, 352], sizes = [8, 32], strides = [1, 1]} : vector<8x512xf32> to vector<8x32xf32>
    %20 = vector.extract_strided_slice %7 {offsets = [0, 384], sizes = [8, 32], strides = [1, 1]} : vector<8x512xf32> to vector<8x32xf32>
    %21 = vector.extract_strided_slice %7 {offsets = [0, 416], sizes = [8, 32], strides = [1, 1]} : vector<8x512xf32> to vector<8x32xf32>
    %22 = vector.extract_strided_slice %7 {offsets = [0, 448], sizes = [8, 32], strides = [1, 1]} : vector<8x512xf32> to vector<8x32xf32>
    %23 = vector.extract_strided_slice %7 {offsets = [0, 480], sizes = [8, 32], strides = [1, 1]} : vector<8x512xf32> to vector<8x32xf32>
    %24 = vector.extract_strided_slice %0 {offsets = [0, 0], sizes = [8, 16], strides = [1, 1]} : vector<8x128xf32> to vector<8x16xf32>
    %25 = vector.extract_strided_slice %0 {offsets = [0, 16], sizes = [8, 16], strides = [1, 1]} : vector<8x128xf32> to vector<8x16xf32>
    %26 = vector.extract_strided_slice %0 {offsets = [0, 32], sizes = [8, 16], strides = [1, 1]} : vector<8x128xf32> to vector<8x16xf32>
    %27 = vector.extract_strided_slice %0 {offsets = [0, 48], sizes = [8, 16], strides = [1, 1]} : vector<8x128xf32> to vector<8x16xf32>
    %28 = vector.extract_strided_slice %0 {offsets = [0, 64], sizes = [8, 16], strides = [1, 1]} : vector<8x128xf32> to vector<8x16xf32>
    %29 = vector.extract_strided_slice %0 {offsets = [0, 80], sizes = [8, 16], strides = [1, 1]} : vector<8x128xf32> to vector<8x16xf32>
    %30 = vector.extract_strided_slice %0 {offsets = [0, 96], sizes = [8, 16], strides = [1, 1]} : vector<8x128xf32> to vector<8x16xf32>
    %31 = vector.extract_strided_slice %0 {offsets = [0, 112], sizes = [8, 16], strides = [1, 1]} : vector<8x128xf32> to vector<8x16xf32>
    %32 = arith.mulf %8, %16 : vector<8x32xf32>
    %cst_6 = arith.constant dense<0.000000e+00> : vector<8xf32>
    %33 = vector.multi_reduction <add>, %32, %cst_6 [1] : vector<8x32xf32> to vector<8xf32>
    %34 = vector.shape_cast %33 : vector<8xf32> to vector<8x1xf32>
    %35 = arith.mulf %8, %17 : vector<8x32xf32>
    %cst_7 = arith.constant dense<0.000000e+00> : vector<8xf32>
    %36 = vector.multi_reduction <add>, %35, %cst_7 [1] : vector<8x32xf32> to vector<8xf32>
    %37 = vector.shape_cast %36 : vector<8xf32> to vector<8x1xf32>
    %38 = arith.mulf %8, %18 : vector<8x32xf32>
    %cst_8 = arith.constant dense<0.000000e+00> : vector<8xf32>
    %39 = vector.multi_reduction <add>, %38, %cst_8 [1] : vector<8x32xf32> to vector<8xf32>
    %40 = vector.shape_cast %39 : vector<8xf32> to vector<8x1xf32>
    %41 = arith.mulf %8, %19 : vector<8x32xf32>
    %cst_9 = arith.constant dense<0.000000e+00> : vector<8xf32>
    %42 = vector.multi_reduction <add>, %41, %cst_9 [1] : vector<8x32xf32> to vector<8xf32>
    %43 = vector.shape_cast %42 : vector<8xf32> to vector<8x1xf32>
    %44 = arith.mulf %8, %20 : vector<8x32xf32>
    %cst_10 = arith.constant dense<0.000000e+00> : vector<8xf32>
    %45 = vector.multi_reduction <add>, %44, %cst_10 [1] : vector<8x32xf32> to vector<8xf32>
    %46 = vector.shape_cast %45 : vector<8xf32> to vector<8x1xf32>
    %47 = arith.mulf %8, %21 : vector<8x32xf32>
    %cst_11 = arith.constant dense<0.000000e+00> : vector<8xf32>
    %48 = vector.multi_reduction <add>, %47, %cst_11 [1] : vector<8x32xf32> to vector<8xf32>
    %49 = vector.shape_cast %48 : vector<8xf32> to vector<8x1xf32>
    %50 = arith.mulf %8, %22 : vector<8x32xf32>
    %cst_12 = arith.constant dense<0.000000e+00> : vector<8xf32>
    %51 = vector.multi_reduction <add>, %50, %cst_12 [1] : vector<8x32xf32> to vector<8xf32>
    %52 = vector.shape_cast %51 : vector<8xf32> to vector<8x1xf32>
    %53 = arith.mulf %8, %23 : vector<8x32xf32>
    %cst_13 = arith.constant dense<0.000000e+00> : vector<8xf32>
    %54 = vector.multi_reduction <add>, %53, %cst_13 [1] : vector<8x32xf32> to vector<8xf32>
    %55 = vector.shape_cast %54 : vector<8xf32> to vector<8x1xf32>
    %56 = tpu.concatenate %34, %37, %40, %43, %46, %49, %52, %55 in 1 : vector<8x1xf32>, vector<8x1xf32>, vector<8x1xf32>, vector<8x1xf32>, vector<8x1xf32>, vector<8x1xf32>, vector<8x1xf32>, vector<8x1xf32> -> vector<8x8xf32>
    %cst_14 = arith.constant dense<0xFF800000> : vector<8xf32>
    %57 = vector.multi_reduction <maximumf>, %56, %cst_14 [1] : vector<8x8xf32> to vector<8xf32>
    %58 = vector.shape_cast %57 : vector<8xf32> to vector<8x1xf32>
    %59 = vector.broadcast %58 : vector<8x1xf32> to vector<8x8xf32>
    %60 = arith.subf %56, %59 : vector<8x8xf32>
    %61 = math.exp %60 : vector<8x8xf32>
    %cst_15 = arith.constant dense<0.000000e+00> : vector<8xf32>
    %62 = vector.multi_reduction <add>, %61, %cst_15 [1] : vector<8x8xf32> to vector<8xf32>
    %63 = vector.shape_cast %62 : vector<8xf32> to vector<8x1xf32>
    %cst_16 = arith.constant 1.000000e+00 : f32
    %64 = vector.broadcast %cst_16 : f32 to vector<8x1xf32>
    %65 = arith.divf %64, %63 : vector<8x1xf32>
    %66 = vector.broadcast %65 : vector<8x1xf32> to vector<8x8xf32>
    %67 = arith.mulf %61, %66 : vector<8x8xf32>
    %68 = vector.extract_strided_slice %67 {offsets = [0, 0], sizes = [8, 1], strides = [1, 1]} : vector<8x8xf32> to vector<8x1xf32>
    %69 = vector.broadcast %68 : vector<8x1xf32> to vector<8x16xf32>
    %70 = arith.mulf %69, %24 : vector<8x16xf32>
    %71 = vector.extract_strided_slice %67 {offsets = [0, 1], sizes = [8, 1], strides = [1, 1]} : vector<8x8xf32> to vector<8x1xf32>
    %72 = vector.broadcast %71 : vector<8x1xf32> to vector<8x16xf32>
    %73 = arith.mulf %72, %25 : vector<8x16xf32>
    %74 = arith.addf %70, %73 : vector<8x16xf32>
    %75 = vector.extract_strided_slice %67 {offsets = [0, 2], sizes = [8, 1], strides = [1, 1]} : vector<8x8xf32> to vector<8x1xf32>
    %76 = vector.broadcast %75 : vector<8x1xf32> to vector<8x16xf32>
    %77 = arith.mulf %76, %26 : vector<8x16xf32>
    %78 = arith.addf %74, %77 : vector<8x16xf32>
    %79 = vector.extract_strided_slice %67 {offsets = [0, 3], sizes = [8, 1], strides = [1, 1]} : vector<8x8xf32> to vector<8x1xf32>
    %80 = vector.broadcast %79 : vector<8x1xf32> to vector<8x16xf32>
    %81 = arith.mulf %80, %27 : vector<8x16xf32>
    %82 = arith.addf %78, %81 : vector<8x16xf32>
    %83 = vector.extract_strided_slice %67 {offsets = [0, 4], sizes = [8, 1], strides = [1, 1]} : vector<8x8xf32> to vector<8x1xf32>
    %84 = vector.broadcast %83 : vector<8x1xf32> to vector<8x16xf32>
    %85 = arith.mulf %84, %28 : vector<8x16xf32>
    %86 = arith.addf %82, %85 : vector<8x16xf32>
    %87 = vector.extract_strided_slice %67 {offsets = [0, 5], sizes = [8, 1], strides = [1, 1]} : vector<8x8xf32> to vector<8x1xf32>
    %88 = vector.broadcast %87 : vector<8x1xf32> to vector<8x16xf32>
    %89 = arith.mulf %88, %29 : vector<8x16xf32>
    %90 = arith.addf %86, %89 : vector<8x16xf32>
    %91 = vector.extract_strided_slice %67 {offsets = [0, 6], sizes = [8, 1], strides = [1, 1]} : vector<8x8xf32> to vector<8x1xf32>
    %92 = vector.broadcast %91 : vector<8x1xf32> to vector<8x16xf32>
    %93 = arith.mulf %92, %30 : vector<8x16xf32>
    %94 = arith.addf %90, %93 : vector<8x16xf32>
    %95 = vector.extract_strided_slice %67 {offsets = [0, 7], sizes = [8, 1], strides = [1, 1]} : vector<8x8xf32> to vector<8x1xf32>
    %96 = vector.broadcast %95 : vector<8x1xf32> to vector<8x16xf32>
    %97 = arith.mulf %96, %31 : vector<8x16xf32>
    %98 = arith.addf %94, %97 : vector<8x16xf32>
    %99 = arith.addf %24, %98 : vector<8x16xf32>
    %100 = arith.mulf %9, %16 : vector<8x32xf32>
    %cst_17 = arith.constant dense<0.000000e+00> : vector<8xf32>
    %101 = vector.multi_reduction <add>, %100, %cst_17 [1] : vector<8x32xf32> to vector<8xf32>
    %102 = vector.shape_cast %101 : vector<8xf32> to vector<8x1xf32>
    %103 = arith.mulf %9, %17 : vector<8x32xf32>
    %cst_18 = arith.constant dense<0.000000e+00> : vector<8xf32>
    %104 = vector.multi_reduction <add>, %103, %cst_18 [1] : vector<8x32xf32> to vector<8xf32>
    %105 = vector.shape_cast %104 : vector<8xf32> to vector<8x1xf32>
    %106 = arith.mulf %9, %18 : vector<8x32xf32>
    %cst_19 = arith.constant dense<0.000000e+00> : vector<8xf32>
    %107 = vector.multi_reduction <add>, %106, %cst_19 [1] : vector<8x32xf32> to vector<8xf32>
    %108 = vector.shape_cast %107 : vector<8xf32> to vector<8x1xf32>
    %109 = arith.mulf %9, %19 : vector<8x32xf32>
    %cst_20 = arith.constant dense<0.000000e+00> : vector<8xf32>
    %110 = vector.multi_reduction <add>, %109, %cst_20 [1] : vector<8x32xf32> to vector<8xf32>
    %111 = vector.shape_cast %110 : vector<8xf32> to vector<8x1xf32>
    %112 = arith.mulf %9, %20 : vector<8x32xf32>
    %cst_21 = arith.constant dense<0.000000e+00> : vector<8xf32>
    %113 = vector.multi_reduction <add>, %112, %cst_21 [1] : vector<8x32xf32> to vector<8xf32>
    %114 = vector.shape_cast %113 : vector<8xf32> to vector<8x1xf32>
    %115 = arith.mulf %9, %21 : vector<8x32xf32>
    %cst_22 = arith.constant dense<0.000000e+00> : vector<8xf32>
    %116 = vector.multi_reduction <add>, %115, %cst_22 [1] : vector<8x32xf32> to vector<8xf32>
    %117 = vector.shape_cast %116 : vector<8xf32> to vector<8x1xf32>
    %118 = arith.mulf %9, %22 : vector<8x32xf32>
    %cst_23 = arith.constant dense<0.000000e+00> : vector<8xf32>
    %119 = vector.multi_reduction <add>, %118, %cst_23 [1] : vector<8x32xf32> to vector<8xf32>
    %120 = vector.shape_cast %119 : vector<8xf32> to vector<8x1xf32>
    %121 = arith.mulf %9, %23 : vector<8x32xf32>
    %cst_24 = arith.constant dense<0.000000e+00> : vector<8xf32>
    %122 = vector.multi_reduction <add>, %121, %cst_24 [1] : vector<8x32xf32> to vector<8xf32>
    %123 = vector.shape_cast %122 : vector<8xf32> to vector<8x1xf32>
    %124 = tpu.concatenate %102, %105, %108, %111, %114, %117, %120, %123 in 1 : vector<8x1xf32>, vector<8x1xf32>, vector<8x1xf32>, vector<8x1xf32>, vector<8x1xf32>, vector<8x1xf32>, vector<8x1xf32>, vector<8x1xf32> -> vector<8x8xf32>
    %cst_25 = arith.constant dense<0xFF800000> : vector<8xf32>
    %125 = vector.multi_reduction <maximumf>, %124, %cst_25 [1] : vector<8x8xf32> to vector<8xf32>
    %126 = vector.shape_cast %125 : vector<8xf32> to vector<8x1xf32>
    %127 = vector.broadcast %126 : vector<8x1xf32> to vector<8x8xf32>
    %128 = arith.subf %124, %127 : vector<8x8xf32>
    %129 = math.exp %128 : vector<8x8xf32>
    %cst_26 = arith.constant dense<0.000000e+00> : vector<8xf32>
    %130 = vector.multi_reduction <add>, %129, %cst_26 [1] : vector<8x8xf32> to vector<8xf32>
    %131 = vector.shape_cast %130 : vector<8xf32> to vector<8x1xf32>
    %cst_27 = arith.constant 1.000000e+00 : f32
    %132 = vector.broadcast %cst_27 : f32 to vector<8x1xf32>
    %133 = arith.divf %132, %131 : vector<8x1xf32>
    %134 = vector.broadcast %133 : vector<8x1xf32> to vector<8x8xf32>
    %135 = arith.mulf %129, %134 : vector<8x8xf32>
    %136 = vector.extract_strided_slice %135 {offsets = [0, 0], sizes = [8, 1], strides = [1, 1]} : vector<8x8xf32> to vector<8x1xf32>
    %137 = vector.broadcast %136 : vector<8x1xf32> to vector<8x16xf32>
    %138 = arith.mulf %137, %24 : vector<8x16xf32>
    %139 = vector.extract_strided_slice %135 {offsets = [0, 1], sizes = [8, 1], strides = [1, 1]} : vector<8x8xf32> to vector<8x1xf32>
    %140 = vector.broadcast %139 : vector<8x1xf32> to vector<8x16xf32>
    %141 = arith.mulf %140, %25 : vector<8x16xf32>
    %142 = arith.addf %138, %141 : vector<8x16xf32>
    %143 = vector.extract_strided_slice %135 {offsets = [0, 2], sizes = [8, 1], strides = [1, 1]} : vector<8x8xf32> to vector<8x1xf32>
    %144 = vector.broadcast %143 : vector<8x1xf32> to vector<8x16xf32>
    %145 = arith.mulf %144, %26 : vector<8x16xf32>
    %146 = arith.addf %142, %145 : vector<8x16xf32>
    %147 = vector.extract_strided_slice %135 {offsets = [0, 3], sizes = [8, 1], strides = [1, 1]} : vector<8x8xf32> to vector<8x1xf32>
    %148 = vector.broadcast %147 : vector<8x1xf32> to vector<8x16xf32>
    %149 = arith.mulf %148, %27 : vector<8x16xf32>
    %150 = arith.addf %146, %149 : vector<8x16xf32>
    %151 = vector.extract_strided_slice %135 {offsets = [0, 4], sizes = [8, 1], strides = [1, 1]} : vector<8x8xf32> to vector<8x1xf32>
    %152 = vector.broadcast %151 : vector<8x1xf32> to vector<8x16xf32>
    %153 = arith.mulf %152, %28 : vector<8x16xf32>
    %154 = arith.addf %150, %153 : vector<8x16xf32>
    %155 = vector.extract_strided_slice %135 {offsets = [0, 5], sizes = [8, 1], strides = [1, 1]} : vector<8x8xf32> to vector<8x1xf32>
    %156 = vector.broadcast %155 : vector<8x1xf32> to vector<8x16xf32>
    %157 = arith.mulf %156, %29 : vector<8x16xf32>
    %158 = arith.addf %154, %157 : vector<8x16xf32>
    %159 = vector.extract_strided_slice %135 {offsets = [0, 6], sizes = [8, 1], strides = [1, 1]} : vector<8x8xf32> to vector<8x1xf32>
    %160 = vector.broadcast %159 : vector<8x1xf32> to vector<8x16xf32>
    %161 = arith.mulf %160, %30 : vector<8x16xf32>
    %162 = arith.addf %158, %161 : vector<8x16xf32>
    %163 = vector.extract_strided_slice %135 {offsets = [0, 7], sizes = [8, 1], strides = [1, 1]} : vector<8x8xf32> to vector<8x1xf32>
    %164 = vector.broadcast %163 : vector<8x1xf32> to vector<8x16xf32>
    %165 = arith.mulf %164, %31 : vector<8x16xf32>
    %166 = arith.addf %162, %165 : vector<8x16xf32>
    %167 = arith.addf %25, %166 : vector<8x16xf32>
    %168 = arith.mulf %10, %16 : vector<8x32xf32>
    %cst_28 = arith.constant dense<0.000000e+00> : vector<8xf32>
    %169 = vector.multi_reduction <add>, %168, %cst_28 [1] : vector<8x32xf32> to vector<8xf32>
    %170 = vector.shape_cast %169 : vector<8xf32> to vector<8x1xf32>
    %171 = arith.mulf %10, %17 : vector<8x32xf32>
    %cst_29 = arith.constant dense<0.000000e+00> : vector<8xf32>
    %172 = vector.multi_reduction <add>, %171, %cst_29 [1] : vector<8x32xf32> to vector<8xf32>
    %173 = vector.shape_cast %172 : vector<8xf32> to vector<8x1xf32>
    %174 = arith.mulf %10, %18 : vector<8x32xf32>
    %cst_30 = arith.constant dense<0.000000e+00> : vector<8xf32>
    %175 = vector.multi_reduction <add>, %174, %cst_30 [1] : vector<8x32xf32> to vector<8xf32>
    %176 = vector.shape_cast %175 : vector<8xf32> to vector<8x1xf32>
    %177 = arith.mulf %10, %19 : vector<8x32xf32>
    %cst_31 = arith.constant dense<0.000000e+00> : vector<8xf32>
    %178 = vector.multi_reduction <add>, %177, %cst_31 [1] : vector<8x32xf32> to vector<8xf32>
    %179 = vector.shape_cast %178 : vector<8xf32> to vector<8x1xf32>
    %180 = arith.mulf %10, %20 : vector<8x32xf32>
    %cst_32 = arith.constant dense<0.000000e+00> : vector<8xf32>
    %181 = vector.multi_reduction <add>, %180, %cst_32 [1] : vector<8x32xf32> to vector<8xf32>
    %182 = vector.shape_cast %181 : vector<8xf32> to vector<8x1xf32>
    %183 = arith.mulf %10, %21 : vector<8x32xf32>
    %cst_33 = arith.constant dense<0.000000e+00> : vector<8xf32>
    %184 = vector.multi_reduction <add>, %183, %cst_33 [1] : vector<8x32xf32> to vector<8xf32>
    %185 = vector.shape_cast %184 : vector<8xf32> to vector<8x1xf32>
    %186 = arith.mulf %10, %22 : vector<8x32xf32>
    %cst_34 = arith.constant dense<0.000000e+00> : vector<8xf32>
    %187 = vector.multi_reduction <add>, %186, %cst_34 [1] : vector<8x32xf32> to vector<8xf32>
    %188 = vector.shape_cast %187 : vector<8xf32> to vector<8x1xf32>
    %189 = arith.mulf %10, %23 : vector<8x32xf32>
    %cst_35 = arith.constant dense<0.000000e+00> : vector<8xf32>
    %190 = vector.multi_reduction <add>, %189, %cst_35 [1] : vector<8x32xf32> to vector<8xf32>
    %191 = vector.shape_cast %190 : vector<8xf32> to vector<8x1xf32>
    %192 = tpu.concatenate %170, %173, %176, %179, %182, %185, %188, %191 in 1 : vector<8x1xf32>, vector<8x1xf32>, vector<8x1xf32>, vector<8x1xf32>, vector<8x1xf32>, vector<8x1xf32>, vector<8x1xf32>, vector<8x1xf32> -> vector<8x8xf32>
    %cst_36 = arith.constant dense<0xFF800000> : vector<8xf32>
    %193 = vector.multi_reduction <maximumf>, %192, %cst_36 [1] : vector<8x8xf32> to vector<8xf32>
    %194 = vector.shape_cast %193 : vector<8xf32> to vector<8x1xf32>
    %195 = vector.broadcast %194 : vector<8x1xf32> to vector<8x8xf32>
    %196 = arith.subf %192, %195 : vector<8x8xf32>
    %197 = math.exp %196 : vector<8x8xf32>
    %cst_37 = arith.constant dense<0.000000e+00> : vector<8xf32>
    %198 = vector.multi_reduction <add>, %197, %cst_37 [1] : vector<8x8xf32> to vector<8xf32>
    %199 = vector.shape_cast %198 : vector<8xf32> to vector<8x1xf32>
    %cst_38 = arith.constant 1.000000e+00 : f32
    %200 = vector.broadcast %cst_38 : f32 to vector<8x1xf32>
    %201 = arith.divf %200, %199 : vector<8x1xf32>
    %202 = vector.broadcast %201 : vector<8x1xf32> to vector<8x8xf32>
    %203 = arith.mulf %197, %202 : vector<8x8xf32>
    %204 = vector.extract_strided_slice %203 {offsets = [0, 0], sizes = [8, 1], strides = [1, 1]} : vector<8x8xf32> to vector<8x1xf32>
    %205 = vector.broadcast %204 : vector<8x1xf32> to vector<8x16xf32>
    %206 = arith.mulf %205, %24 : vector<8x16xf32>
    %207 = vector.extract_strided_slice %203 {offsets = [0, 1], sizes = [8, 1], strides = [1, 1]} : vector<8x8xf32> to vector<8x1xf32>
    %208 = vector.broadcast %207 : vector<8x1xf32> to vector<8x16xf32>
    %209 = arith.mulf %208, %25 : vector<8x16xf32>
    %210 = arith.addf %206, %209 : vector<8x16xf32>
    %211 = vector.extract_strided_slice %203 {offsets = [0, 2], sizes = [8, 1], strides = [1, 1]} : vector<8x8xf32> to vector<8x1xf32>
    %212 = vector.broadcast %211 : vector<8x1xf32> to vector<8x16xf32>
    %213 = arith.mulf %212, %26 : vector<8x16xf32>
    %214 = arith.addf %210, %213 : vector<8x16xf32>
    %215 = vector.extract_strided_slice %203 {offsets = [0, 3], sizes = [8, 1], strides = [1, 1]} : vector<8x8xf32> to vector<8x1xf32>
    %216 = vector.broadcast %215 : vector<8x1xf32> to vector<8x16xf32>
    %217 = arith.mulf %216, %27 : vector<8x16xf32>
    %218 = arith.addf %214, %217 : vector<8x16xf32>
    %219 = vector.extract_strided_slice %203 {offsets = [0, 4], sizes = [8, 1], strides = [1, 1]} : vector<8x8xf32> to vector<8x1xf32>
    %220 = vector.broadcast %219 : vector<8x1xf32> to vector<8x16xf32>
    %221 = arith.mulf %220, %28 : vector<8x16xf32>
    %222 = arith.addf %218, %221 : vector<8x16xf32>
    %223 = vector.extract_strided_slice %203 {offsets = [0, 5], sizes = [8, 1], strides = [1, 1]} : vector<8x8xf32> to vector<8x1xf32>
    %224 = vector.broadcast %223 : vector<8x1xf32> to vector<8x16xf32>
    %225 = arith.mulf %224, %29 : vector<8x16xf32>
    %226 = arith.addf %222, %225 : vector<8x16xf32>
    %227 = vector.extract_strided_slice %203 {offsets = [0, 6], sizes = [8, 1], strides = [1, 1]} : vector<8x8xf32> to vector<8x1xf32>
    %228 = vector.broadcast %227 : vector<8x1xf32> to vector<8x16xf32>
    %229 = arith.mulf %228, %30 : vector<8x16xf32>
    %230 = arith.addf %226, %229 : vector<8x16xf32>
    %231 = vector.extract_strided_slice %203 {offsets = [0, 7], sizes = [8, 1], strides = [1, 1]} : vector<8x8xf32> to vector<8x1xf32>
    %232 = vector.broadcast %231 : vector<8x1xf32> to vector<8x16xf32>
    %233 = arith.mulf %232, %31 : vector<8x16xf32>
    %234 = arith.addf %230, %233 : vector<8x16xf32>
    %235 = arith.addf %26, %234 : vector<8x16xf32>
    %236 = arith.mulf %11, %16 : vector<8x32xf32>
    %cst_39 = arith.constant dense<0.000000e+00> : vector<8xf32>
    %237 = vector.multi_reduction <add>, %236, %cst_39 [1] : vector<8x32xf32> to vector<8xf32>
    %238 = vector.shape_cast %237 : vector<8xf32> to vector<8x1xf32>
    %239 = arith.mulf %11, %17 : vector<8x32xf32>
    %cst_40 = arith.constant dense<0.000000e+00> : vector<8xf32>
    %240 = vector.multi_reduction <add>, %239, %cst_40 [1] : vector<8x32xf32> to vector<8xf32>
    %241 = vector.shape_cast %240 : vector<8xf32> to vector<8x1xf32>
    %242 = arith.mulf %11, %18 : vector<8x32xf32>
    %cst_41 = arith.constant dense<0.000000e+00> : vector<8xf32>
    %243 = vector.multi_reduction <add>, %242, %cst_41 [1] : vector<8x32xf32> to vector<8xf32>
    %244 = vector.shape_cast %243 : vector<8xf32> to vector<8x1xf32>
    %245 = arith.mulf %11, %19 : vector<8x32xf32>
    %cst_42 = arith.constant dense<0.000000e+00> : vector<8xf32>
    %246 = vector.multi_reduction <add>, %245, %cst_42 [1] : vector<8x32xf32> to vector<8xf32>
    %247 = vector.shape_cast %246 : vector<8xf32> to vector<8x1xf32>
    %248 = arith.mulf %11, %20 : vector<8x32xf32>
    %cst_43 = arith.constant dense<0.000000e+00> : vector<8xf32>
    %249 = vector.multi_reduction <add>, %248, %cst_43 [1] : vector<8x32xf32> to vector<8xf32>
    %250 = vector.shape_cast %249 : vector<8xf32> to vector<8x1xf32>
    %251 = arith.mulf %11, %21 : vector<8x32xf32>
    %cst_44 = arith.constant dense<0.000000e+00> : vector<8xf32>
    %252 = vector.multi_reduction <add>, %251, %cst_44 [1] : vector<8x32xf32> to vector<8xf32>
    %253 = vector.shape_cast %252 : vector<8xf32> to vector<8x1xf32>
    %254 = arith.mulf %11, %22 : vector<8x32xf32>
    %cst_45 = arith.constant dense<0.000000e+00> : vector<8xf32>
    %255 = vector.multi_reduction <add>, %254, %cst_45 [1] : vector<8x32xf32> to vector<8xf32>
    %256 = vector.shape_cast %255 : vector<8xf32> to vector<8x1xf32>
    %257 = arith.mulf %11, %23 : vector<8x32xf32>
    %cst_46 = arith.constant dense<0.000000e+00> : vector<8xf32>
    %258 = vector.multi_reduction <add>, %257, %cst_46 [1] : vector<8x32xf32> to vector<8xf32>
    %259 = vector.shape_cast %258 : vector<8xf32> to vector<8x1xf32>
    %260 = tpu.concatenate %238, %241, %244, %247, %250, %253, %256, %259 in 1 : vector<8x1xf32>, vector<8x1xf32>, vector<8x1xf32>, vector<8x1xf32>, vector<8x1xf32>, vector<8x1xf32>, vector<8x1xf32>, vector<8x1xf32> -> vector<8x8xf32>
    %cst_47 = arith.constant dense<0xFF800000> : vector<8xf32>
    %261 = vector.multi_reduction <maximumf>, %260, %cst_47 [1] : vector<8x8xf32> to vector<8xf32>
    %262 = vector.shape_cast %261 : vector<8xf32> to vector<8x1xf32>
    %263 = vector.broadcast %262 : vector<8x1xf32> to vector<8x8xf32>
    %264 = arith.subf %260, %263 : vector<8x8xf32>
    %265 = math.exp %264 : vector<8x8xf32>
    %cst_48 = arith.constant dense<0.000000e+00> : vector<8xf32>
    %266 = vector.multi_reduction <add>, %265, %cst_48 [1] : vector<8x8xf32> to vector<8xf32>
    %267 = vector.shape_cast %266 : vector<8xf32> to vector<8x1xf32>
    %cst_49 = arith.constant 1.000000e+00 : f32
    %268 = vector.broadcast %cst_49 : f32 to vector<8x1xf32>
    %269 = arith.divf %268, %267 : vector<8x1xf32>
    %270 = vector.broadcast %269 : vector<8x1xf32> to vector<8x8xf32>
    %271 = arith.mulf %265, %270 : vector<8x8xf32>
    %272 = vector.extract_strided_slice %271 {offsets = [0, 0], sizes = [8, 1], strides = [1, 1]} : vector<8x8xf32> to vector<8x1xf32>
    %273 = vector.broadcast %272 : vector<8x1xf32> to vector<8x16xf32>
    %274 = arith.mulf %273, %24 : vector<8x16xf32>
    %275 = vector.extract_strided_slice %271 {offsets = [0, 1], sizes = [8, 1], strides = [1, 1]} : vector<8x8xf32> to vector<8x1xf32>
    %276 = vector.broadcast %275 : vector<8x1xf32> to vector<8x16xf32>
    %277 = arith.mulf %276, %25 : vector<8x16xf32>
    %278 = arith.addf %274, %277 : vector<8x16xf32>
    %279 = vector.extract_strided_slice %271 {offsets = [0, 2], sizes = [8, 1], strides = [1, 1]} : vector<8x8xf32> to vector<8x1xf32>
    %280 = vector.broadcast %279 : vector<8x1xf32> to vector<8x16xf32>
    %281 = arith.mulf %280, %26 : vector<8x16xf32>
    %282 = arith.addf %278, %281 : vector<8x16xf32>
    %283 = vector.extract_strided_slice %271 {offsets = [0, 3], sizes = [8, 1], strides = [1, 1]} : vector<8x8xf32> to vector<8x1xf32>
    %284 = vector.broadcast %283 : vector<8x1xf32> to vector<8x16xf32>
    %285 = arith.mulf %284, %27 : vector<8x16xf32>
    %286 = arith.addf %282, %285 : vector<8x16xf32>
    %287 = vector.extract_strided_slice %271 {offsets = [0, 4], sizes = [8, 1], strides = [1, 1]} : vector<8x8xf32> to vector<8x1xf32>
    %288 = vector.broadcast %287 : vector<8x1xf32> to vector<8x16xf32>
    %289 = arith.mulf %288, %28 : vector<8x16xf32>
    %290 = arith.addf %286, %289 : vector<8x16xf32>
    %291 = vector.extract_strided_slice %271 {offsets = [0, 5], sizes = [8, 1], strides = [1, 1]} : vector<8x8xf32> to vector<8x1xf32>
    %292 = vector.broadcast %291 : vector<8x1xf32> to vector<8x16xf32>
    %293 = arith.mulf %292, %29 : vector<8x16xf32>
    %294 = arith.addf %290, %293 : vector<8x16xf32>
    %295 = vector.extract_strided_slice %271 {offsets = [0, 6], sizes = [8, 1], strides = [1, 1]} : vector<8x8xf32> to vector<8x1xf32>
    %296 = vector.broadcast %295 : vector<8x1xf32> to vector<8x16xf32>
    %297 = arith.mulf %296, %30 : vector<8x16xf32>
    %298 = arith.addf %294, %297 : vector<8x16xf32>
    %299 = vector.extract_strided_slice %271 {offsets = [0, 7], sizes = [8, 1], strides = [1, 1]} : vector<8x8xf32> to vector<8x1xf32>
    %300 = vector.broadcast %299 : vector<8x1xf32> to vector<8x16xf32>
    %301 = arith.mulf %300, %31 : vector<8x16xf32>
    %302 = arith.addf %298, %301 : vector<8x16xf32>
    %303 = arith.addf %27, %302 : vector<8x16xf32>
    %304 = arith.mulf %12, %16 : vector<8x32xf32>
    %cst_50 = arith.constant dense<0.000000e+00> : vector<8xf32>
    %305 = vector.multi_reduction <add>, %304, %cst_50 [1] : vector<8x32xf32> to vector<8xf32>
    %306 = vector.shape_cast %305 : vector<8xf32> to vector<8x1xf32>
    %307 = arith.mulf %12, %17 : vector<8x32xf32>
    %cst_51 = arith.constant dense<0.000000e+00> : vector<8xf32>
    %308 = vector.multi_reduction <add>, %307, %cst_51 [1] : vector<8x32xf32> to vector<8xf32>
    %309 = vector.shape_cast %308 : vector<8xf32> to vector<8x1xf32>
    %310 = arith.mulf %12, %18 : vector<8x32xf32>
    %cst_52 = arith.constant dense<0.000000e+00> : vector<8xf32>
    %311 = vector.multi_reduction <add>, %310, %cst_52 [1] : vector<8x32xf32> to vector<8xf32>
    %312 = vector.shape_cast %311 : vector<8xf32> to vector<8x1xf32>
    %313 = arith.mulf %12, %19 : vector<8x32xf32>
    %cst_53 = arith.constant dense<0.000000e+00> : vector<8xf32>
    %314 = vector.multi_reduction <add>, %313, %cst_53 [1] : vector<8x32xf32> to vector<8xf32>
    %315 = vector.shape_cast %314 : vector<8xf32> to vector<8x1xf32>
    %316 = arith.mulf %12, %20 : vector<8x32xf32>
    %cst_54 = arith.constant dense<0.000000e+00> : vector<8xf32>
    %317 = vector.multi_reduction <add>, %316, %cst_54 [1] : vector<8x32xf32> to vector<8xf32>
    %318 = vector.shape_cast %317 : vector<8xf32> to vector<8x1xf32>
    %319 = arith.mulf %12, %21 : vector<8x32xf32>
    %cst_55 = arith.constant dense<0.000000e+00> : vector<8xf32>
    %320 = vector.multi_reduction <add>, %319, %cst_55 [1] : vector<8x32xf32> to vector<8xf32>
    %321 = vector.shape_cast %320 : vector<8xf32> to vector<8x1xf32>
    %322 = arith.mulf %12, %22 : vector<8x32xf32>
    %cst_56 = arith.constant dense<0.000000e+00> : vector<8xf32>
    %323 = vector.multi_reduction <add>, %322, %cst_56 [1] : vector<8x32xf32> to vector<8xf32>
    %324 = vector.shape_cast %323 : vector<8xf32> to vector<8x1xf32>
    %325 = arith.mulf %12, %23 : vector<8x32xf32>
    %cst_57 = arith.constant dense<0.000000e+00> : vector<8xf32>
    %326 = vector.multi_reduction <add>, %325, %cst_57 [1] : vector<8x32xf32> to vector<8xf32>
    %327 = vector.shape_cast %326 : vector<8xf32> to vector<8x1xf32>
    %328 = tpu.concatenate %306, %309, %312, %315, %318, %321, %324, %327 in 1 : vector<8x1xf32>, vector<8x1xf32>, vector<8x1xf32>, vector<8x1xf32>, vector<8x1xf32>, vector<8x1xf32>, vector<8x1xf32>, vector<8x1xf32> -> vector<8x8xf32>
    %cst_58 = arith.constant dense<0xFF800000> : vector<8xf32>
    %329 = vector.multi_reduction <maximumf>, %328, %cst_58 [1] : vector<8x8xf32> to vector<8xf32>
    %330 = vector.shape_cast %329 : vector<8xf32> to vector<8x1xf32>
    %331 = vector.broadcast %330 : vector<8x1xf32> to vector<8x8xf32>
    %332 = arith.subf %328, %331 : vector<8x8xf32>
    %333 = math.exp %332 : vector<8x8xf32>
    %cst_59 = arith.constant dense<0.000000e+00> : vector<8xf32>
    %334 = vector.multi_reduction <add>, %333, %cst_59 [1] : vector<8x8xf32> to vector<8xf32>
    %335 = vector.shape_cast %334 : vector<8xf32> to vector<8x1xf32>
    %cst_60 = arith.constant 1.000000e+00 : f32
    %336 = vector.broadcast %cst_60 : f32 to vector<8x1xf32>
    %337 = arith.divf %336, %335 : vector<8x1xf32>
    %338 = vector.broadcast %337 : vector<8x1xf32> to vector<8x8xf32>
    %339 = arith.mulf %333, %338 : vector<8x8xf32>
    %340 = vector.extract_strided_slice %339 {offsets = [0, 0], sizes = [8, 1], strides = [1, 1]} : vector<8x8xf32> to vector<8x1xf32>
    %341 = vector.broadcast %340 : vector<8x1xf32> to vector<8x16xf32>
    %342 = arith.mulf %341, %24 : vector<8x16xf32>
    %343 = vector.extract_strided_slice %339 {offsets = [0, 1], sizes = [8, 1], strides = [1, 1]} : vector<8x8xf32> to vector<8x1xf32>
    %344 = vector.broadcast %343 : vector<8x1xf32> to vector<8x16xf32>
    %345 = arith.mulf %344, %25 : vector<8x16xf32>
    %346 = arith.addf %342, %345 : vector<8x16xf32>
    %347 = vector.extract_strided_slice %339 {offsets = [0, 2], sizes = [8, 1], strides = [1, 1]} : vector<8x8xf32> to vector<8x1xf32>
    %348 = vector.broadcast %347 : vector<8x1xf32> to vector<8x16xf32>
    %349 = arith.mulf %348, %26 : vector<8x16xf32>
    %350 = arith.addf %346, %349 : vector<8x16xf32>
    %351 = vector.extract_strided_slice %339 {offsets = [0, 3], sizes = [8, 1], strides = [1, 1]} : vector<8x8xf32> to vector<8x1xf32>
    %352 = vector.broadcast %351 : vector<8x1xf32> to vector<8x16xf32>
    %353 = arith.mulf %352, %27 : vector<8x16xf32>
    %354 = arith.addf %350, %353 : vector<8x16xf32>
    %355 = vector.extract_strided_slice %339 {offsets = [0, 4], sizes = [8, 1], strides = [1, 1]} : vector<8x8xf32> to vector<8x1xf32>
    %356 = vector.broadcast %355 : vector<8x1xf32> to vector<8x16xf32>
    %357 = arith.mulf %356, %28 : vector<8x16xf32>
    %358 = arith.addf %354, %357 : vector<8x16xf32>
    %359 = vector.extract_strided_slice %339 {offsets = [0, 5], sizes = [8, 1], strides = [1, 1]} : vector<8x8xf32> to vector<8x1xf32>
    %360 = vector.broadcast %359 : vector<8x1xf32> to vector<8x16xf32>
    %361 = arith.mulf %360, %29 : vector<8x16xf32>
    %362 = arith.addf %358, %361 : vector<8x16xf32>
    %363 = vector.extract_strided_slice %339 {offsets = [0, 6], sizes = [8, 1], strides = [1, 1]} : vector<8x8xf32> to vector<8x1xf32>
    %364 = vector.broadcast %363 : vector<8x1xf32> to vector<8x16xf32>
    %365 = arith.mulf %364, %30 : vector<8x16xf32>
    %366 = arith.addf %362, %365 : vector<8x16xf32>
    %367 = vector.extract_strided_slice %339 {offsets = [0, 7], sizes = [8, 1], strides = [1, 1]} : vector<8x8xf32> to vector<8x1xf32>
    %368 = vector.broadcast %367 : vector<8x1xf32> to vector<8x16xf32>
    %369 = arith.mulf %368, %31 : vector<8x16xf32>
    %370 = arith.addf %366, %369 : vector<8x16xf32>
    %371 = arith.addf %28, %370 : vector<8x16xf32>
    %372 = arith.mulf %13, %16 : vector<8x32xf32>
    %cst_61 = arith.constant dense<0.000000e+00> : vector<8xf32>
    %373 = vector.multi_reduction <add>, %372, %cst_61 [1] : vector<8x32xf32> to vector<8xf32>
    %374 = vector.shape_cast %373 : vector<8xf32> to vector<8x1xf32>
    %375 = arith.mulf %13, %17 : vector<8x32xf32>
    %cst_62 = arith.constant dense<0.000000e+00> : vector<8xf32>
    %376 = vector.multi_reduction <add>, %375, %cst_62 [1] : vector<8x32xf32> to vector<8xf32>
    %377 = vector.shape_cast %376 : vector<8xf32> to vector<8x1xf32>
    %378 = arith.mulf %13, %18 : vector<8x32xf32>
    %cst_63 = arith.constant dense<0.000000e+00> : vector<8xf32>
    %379 = vector.multi_reduction <add>, %378, %cst_63 [1] : vector<8x32xf32> to vector<8xf32>
    %380 = vector.shape_cast %379 : vector<8xf32> to vector<8x1xf32>
    %381 = arith.mulf %13, %19 : vector<8x32xf32>
    %cst_64 = arith.constant dense<0.000000e+00> : vector<8xf32>
    %382 = vector.multi_reduction <add>, %381, %cst_64 [1] : vector<8x32xf32> to vector<8xf32>
    %383 = vector.shape_cast %382 : vector<8xf32> to vector<8x1xf32>
    %384 = arith.mulf %13, %20 : vector<8x32xf32>
    %cst_65 = arith.constant dense<0.000000e+00> : vector<8xf32>
    %385 = vector.multi_reduction <add>, %384, %cst_65 [1] : vector<8x32xf32> to vector<8xf32>
    %386 = vector.shape_cast %385 : vector<8xf32> to vector<8x1xf32>
    %387 = arith.mulf %13, %21 : vector<8x32xf32>
    %cst_66 = arith.constant dense<0.000000e+00> : vector<8xf32>
    %388 = vector.multi_reduction <add>, %387, %cst_66 [1] : vector<8x32xf32> to vector<8xf32>
    %389 = vector.shape_cast %388 : vector<8xf32> to vector<8x1xf32>
    %390 = arith.mulf %13, %22 : vector<8x32xf32>
    %cst_67 = arith.constant dense<0.000000e+00> : vector<8xf32>
    %391 = vector.multi_reduction <add>, %390, %cst_67 [1] : vector<8x32xf32> to vector<8xf32>
    %392 = vector.shape_cast %391 : vector<8xf32> to vector<8x1xf32>
    %393 = arith.mulf %13, %23 : vector<8x32xf32>
    %cst_68 = arith.constant dense<0.000000e+00> : vector<8xf32>
    %394 = vector.multi_reduction <add>, %393, %cst_68 [1] : vector<8x32xf32> to vector<8xf32>
    %395 = vector.shape_cast %394 : vector<8xf32> to vector<8x1xf32>
    %396 = tpu.concatenate %374, %377, %380, %383, %386, %389, %392, %395 in 1 : vector<8x1xf32>, vector<8x1xf32>, vector<8x1xf32>, vector<8x1xf32>, vector<8x1xf32>, vector<8x1xf32>, vector<8x1xf32>, vector<8x1xf32> -> vector<8x8xf32>
    %cst_69 = arith.constant dense<0xFF800000> : vector<8xf32>
    %397 = vector.multi_reduction <maximumf>, %396, %cst_69 [1] : vector<8x8xf32> to vector<8xf32>
    %398 = vector.shape_cast %397 : vector<8xf32> to vector<8x1xf32>
    %399 = vector.broadcast %398 : vector<8x1xf32> to vector<8x8xf32>
    %400 = arith.subf %396, %399 : vector<8x8xf32>
    %401 = math.exp %400 : vector<8x8xf32>
    %cst_70 = arith.constant dense<0.000000e+00> : vector<8xf32>
    %402 = vector.multi_reduction <add>, %401, %cst_70 [1] : vector<8x8xf32> to vector<8xf32>
    %403 = vector.shape_cast %402 : vector<8xf32> to vector<8x1xf32>
    %cst_71 = arith.constant 1.000000e+00 : f32
    %404 = vector.broadcast %cst_71 : f32 to vector<8x1xf32>
    %405 = arith.divf %404, %403 : vector<8x1xf32>
    %406 = vector.broadcast %405 : vector<8x1xf32> to vector<8x8xf32>
    %407 = arith.mulf %401, %406 : vector<8x8xf32>
    %408 = vector.extract_strided_slice %407 {offsets = [0, 0], sizes = [8, 1], strides = [1, 1]} : vector<8x8xf32> to vector<8x1xf32>
    %409 = vector.broadcast %408 : vector<8x1xf32> to vector<8x16xf32>
    %410 = arith.mulf %409, %24 : vector<8x16xf32>
    %411 = vector.extract_strided_slice %407 {offsets = [0, 1], sizes = [8, 1], strides = [1, 1]} : vector<8x8xf32> to vector<8x1xf32>
    %412 = vector.broadcast %411 : vector<8x1xf32> to vector<8x16xf32>
    %413 = arith.mulf %412, %25 : vector<8x16xf32>
    %414 = arith.addf %410, %413 : vector<8x16xf32>
    %415 = vector.extract_strided_slice %407 {offsets = [0, 2], sizes = [8, 1], strides = [1, 1]} : vector<8x8xf32> to vector<8x1xf32>
    %416 = vector.broadcast %415 : vector<8x1xf32> to vector<8x16xf32>
    %417 = arith.mulf %416, %26 : vector<8x16xf32>
    %418 = arith.addf %414, %417 : vector<8x16xf32>
    %419 = vector.extract_strided_slice %407 {offsets = [0, 3], sizes = [8, 1], strides = [1, 1]} : vector<8x8xf32> to vector<8x1xf32>
    %420 = vector.broadcast %419 : vector<8x1xf32> to vector<8x16xf32>
    %421 = arith.mulf %420, %27 : vector<8x16xf32>
    %422 = arith.addf %418, %421 : vector<8x16xf32>
    %423 = vector.extract_strided_slice %407 {offsets = [0, 4], sizes = [8, 1], strides = [1, 1]} : vector<8x8xf32> to vector<8x1xf32>
    %424 = vector.broadcast %423 : vector<8x1xf32> to vector<8x16xf32>
    %425 = arith.mulf %424, %28 : vector<8x16xf32>
    %426 = arith.addf %422, %425 : vector<8x16xf32>
    %427 = vector.extract_strided_slice %407 {offsets = [0, 5], sizes = [8, 1], strides = [1, 1]} : vector<8x8xf32> to vector<8x1xf32>
    %428 = vector.broadcast %427 : vector<8x1xf32> to vector<8x16xf32>
    %429 = arith.mulf %428, %29 : vector<8x16xf32>
    %430 = arith.addf %426, %429 : vector<8x16xf32>
    %431 = vector.extract_strided_slice %407 {offsets = [0, 6], sizes = [8, 1], strides = [1, 1]} : vector<8x8xf32> to vector<8x1xf32>
    %432 = vector.broadcast %431 : vector<8x1xf32> to vector<8x16xf32>
    %433 = arith.mulf %432, %30 : vector<8x16xf32>
    %434 = arith.addf %430, %433 : vector<8x16xf32>
    %435 = vector.extract_strided_slice %407 {offsets = [0, 7], sizes = [8, 1], strides = [1, 1]} : vector<8x8xf32> to vector<8x1xf32>
    %436 = vector.broadcast %435 : vector<8x1xf32> to vector<8x16xf32>
    %437 = arith.mulf %436, %31 : vector<8x16xf32>
    %438 = arith.addf %434, %437 : vector<8x16xf32>
    %439 = arith.addf %29, %438 : vector<8x16xf32>
    %440 = arith.mulf %14, %16 : vector<8x32xf32>
    %cst_72 = arith.constant dense<0.000000e+00> : vector<8xf32>
    %441 = vector.multi_reduction <add>, %440, %cst_72 [1] : vector<8x32xf32> to vector<8xf32>
    %442 = vector.shape_cast %441 : vector<8xf32> to vector<8x1xf32>
    %443 = arith.mulf %14, %17 : vector<8x32xf32>
    %cst_73 = arith.constant dense<0.000000e+00> : vector<8xf32>
    %444 = vector.multi_reduction <add>, %443, %cst_73 [1] : vector<8x32xf32> to vector<8xf32>
    %445 = vector.shape_cast %444 : vector<8xf32> to vector<8x1xf32>
    %446 = arith.mulf %14, %18 : vector<8x32xf32>
    %cst_74 = arith.constant dense<0.000000e+00> : vector<8xf32>
    %447 = vector.multi_reduction <add>, %446, %cst_74 [1] : vector<8x32xf32> to vector<8xf32>
    %448 = vector.shape_cast %447 : vector<8xf32> to vector<8x1xf32>
    %449 = arith.mulf %14, %19 : vector<8x32xf32>
    %cst_75 = arith.constant dense<0.000000e+00> : vector<8xf32>
    %450 = vector.multi_reduction <add>, %449, %cst_75 [1] : vector<8x32xf32> to vector<8xf32>
    %451 = vector.shape_cast %450 : vector<8xf32> to vector<8x1xf32>
    %452 = arith.mulf %14, %20 : vector<8x32xf32>
    %cst_76 = arith.constant dense<0.000000e+00> : vector<8xf32>
    %453 = vector.multi_reduction <add>, %452, %cst_76 [1] : vector<8x32xf32> to vector<8xf32>
    %454 = vector.shape_cast %453 : vector<8xf32> to vector<8x1xf32>
    %455 = arith.mulf %14, %21 : vector<8x32xf32>
    %cst_77 = arith.constant dense<0.000000e+00> : vector<8xf32>
    %456 = vector.multi_reduction <add>, %455, %cst_77 [1] : vector<8x32xf32> to vector<8xf32>
    %457 = vector.shape_cast %456 : vector<8xf32> to vector<8x1xf32>
    %458 = arith.mulf %14, %22 : vector<8x32xf32>
    %cst_78 = arith.constant dense<0.000000e+00> : vector<8xf32>
    %459 = vector.multi_reduction <add>, %458, %cst_78 [1] : vector<8x32xf32> to vector<8xf32>
    %460 = vector.shape_cast %459 : vector<8xf32> to vector<8x1xf32>
    %461 = arith.mulf %14, %23 : vector<8x32xf32>
    %cst_79 = arith.constant dense<0.000000e+00> : vector<8xf32>
    %462 = vector.multi_reduction <add>, %461, %cst_79 [1] : vector<8x32xf32> to vector<8xf32>
    %463 = vector.shape_cast %462 : vector<8xf32> to vector<8x1xf32>
    %464 = tpu.concatenate %442, %445, %448, %451, %454, %457, %460, %463 in 1 : vector<8x1xf32>, vector<8x1xf32>, vector<8x1xf32>, vector<8x1xf32>, vector<8x1xf32>, vector<8x1xf32>, vector<8x1xf32>, vector<8x1xf32> -> vector<8x8xf32>
    %cst_80 = arith.constant dense<0xFF800000> : vector<8xf32>
    %465 = vector.multi_reduction <maximumf>, %464, %cst_80 [1] : vector<8x8xf32> to vector<8xf32>
    %466 = vector.shape_cast %465 : vector<8xf32> to vector<8x1xf32>
    %467 = vector.broadcast %466 : vector<8x1xf32> to vector<8x8xf32>
    %468 = arith.subf %464, %467 : vector<8x8xf32>
    %469 = math.exp %468 : vector<8x8xf32>
    %cst_81 = arith.constant dense<0.000000e+00> : vector<8xf32>
    %470 = vector.multi_reduction <add>, %469, %cst_81 [1] : vector<8x8xf32> to vector<8xf32>
    %471 = vector.shape_cast %470 : vector<8xf32> to vector<8x1xf32>
    %cst_82 = arith.constant 1.000000e+00 : f32
    %472 = vector.broadcast %cst_82 : f32 to vector<8x1xf32>
    %473 = arith.divf %472, %471 : vector<8x1xf32>
    %474 = vector.broadcast %473 : vector<8x1xf32> to vector<8x8xf32>
    %475 = arith.mulf %469, %474 : vector<8x8xf32>
    %476 = vector.extract_strided_slice %475 {offsets = [0, 0], sizes = [8, 1], strides = [1, 1]} : vector<8x8xf32> to vector<8x1xf32>
    %477 = vector.broadcast %476 : vector<8x1xf32> to vector<8x16xf32>
    %478 = arith.mulf %477, %24 : vector<8x16xf32>
    %479 = vector.extract_strided_slice %475 {offsets = [0, 1], sizes = [8, 1], strides = [1, 1]} : vector<8x8xf32> to vector<8x1xf32>
    %480 = vector.broadcast %479 : vector<8x1xf32> to vector<8x16xf32>
    %481 = arith.mulf %480, %25 : vector<8x16xf32>
    %482 = arith.addf %478, %481 : vector<8x16xf32>
    %483 = vector.extract_strided_slice %475 {offsets = [0, 2], sizes = [8, 1], strides = [1, 1]} : vector<8x8xf32> to vector<8x1xf32>
    %484 = vector.broadcast %483 : vector<8x1xf32> to vector<8x16xf32>
    %485 = arith.mulf %484, %26 : vector<8x16xf32>
    %486 = arith.addf %482, %485 : vector<8x16xf32>
    %487 = vector.extract_strided_slice %475 {offsets = [0, 3], sizes = [8, 1], strides = [1, 1]} : vector<8x8xf32> to vector<8x1xf32>
    %488 = vector.broadcast %487 : vector<8x1xf32> to vector<8x16xf32>
    %489 = arith.mulf %488, %27 : vector<8x16xf32>
    %490 = arith.addf %486, %489 : vector<8x16xf32>
    %491 = vector.extract_strided_slice %475 {offsets = [0, 4], sizes = [8, 1], strides = [1, 1]} : vector<8x8xf32> to vector<8x1xf32>
    %492 = vector.broadcast %491 : vector<8x1xf32> to vector<8x16xf32>
    %493 = arith.mulf %492, %28 : vector<8x16xf32>
    %494 = arith.addf %490, %493 : vector<8x16xf32>
    %495 = vector.extract_strided_slice %475 {offsets = [0, 5], sizes = [8, 1], strides = [1, 1]} : vector<8x8xf32> to vector<8x1xf32>
    %496 = vector.broadcast %495 : vector<8x1xf32> to vector<8x16xf32>
    %497 = arith.mulf %496, %29 : vector<8x16xf32>
    %498 = arith.addf %494, %497 : vector<8x16xf32>
    %499 = vector.extract_strided_slice %475 {offsets = [0, 6], sizes = [8, 1], strides = [1, 1]} : vector<8x8xf32> to vector<8x1xf32>
    %500 = vector.broadcast %499 : vector<8x1xf32> to vector<8x16xf32>
    %501 = arith.mulf %500, %30 : vector<8x16xf32>
    %502 = arith.addf %498, %501 : vector<8x16xf32>
    %503 = vector.extract_strided_slice %475 {offsets = [0, 7], sizes = [8, 1], strides = [1, 1]} : vector<8x8xf32> to vector<8x1xf32>
    %504 = vector.broadcast %503 : vector<8x1xf32> to vector<8x16xf32>
    %505 = arith.mulf %504, %31 : vector<8x16xf32>
    %506 = arith.addf %502, %505 : vector<8x16xf32>
    %507 = arith.addf %30, %506 : vector<8x16xf32>
    %508 = arith.mulf %15, %16 : vector<8x32xf32>
    %cst_83 = arith.constant dense<0.000000e+00> : vector<8xf32>
    %509 = vector.multi_reduction <add>, %508, %cst_83 [1] : vector<8x32xf32> to vector<8xf32>
    %510 = vector.shape_cast %509 : vector<8xf32> to vector<8x1xf32>
    %511 = arith.mulf %15, %17 : vector<8x32xf32>
    %cst_84 = arith.constant dense<0.000000e+00> : vector<8xf32>
    %512 = vector.multi_reduction <add>, %511, %cst_84 [1] : vector<8x32xf32> to vector<8xf32>
    %513 = vector.shape_cast %512 : vector<8xf32> to vector<8x1xf32>
    %514 = arith.mulf %15, %18 : vector<8x32xf32>
    %cst_85 = arith.constant dense<0.000000e+00> : vector<8xf32>
    %515 = vector.multi_reduction <add>, %514, %cst_85 [1] : vector<8x32xf32> to vector<8xf32>
    %516 = vector.shape_cast %515 : vector<8xf32> to vector<8x1xf32>
    %517 = arith.mulf %15, %19 : vector<8x32xf32>
    %cst_86 = arith.constant dense<0.000000e+00> : vector<8xf32>
    %518 = vector.multi_reduction <add>, %517, %cst_86 [1] : vector<8x32xf32> to vector<8xf32>
    %519 = vector.shape_cast %518 : vector<8xf32> to vector<8x1xf32>
    %520 = arith.mulf %15, %20 : vector<8x32xf32>
    %cst_87 = arith.constant dense<0.000000e+00> : vector<8xf32>
    %521 = vector.multi_reduction <add>, %520, %cst_87 [1] : vector<8x32xf32> to vector<8xf32>
    %522 = vector.shape_cast %521 : vector<8xf32> to vector<8x1xf32>
    %523 = arith.mulf %15, %21 : vector<8x32xf32>
    %cst_88 = arith.constant dense<0.000000e+00> : vector<8xf32>
    %524 = vector.multi_reduction <add>, %523, %cst_88 [1] : vector<8x32xf32> to vector<8xf32>
    %525 = vector.shape_cast %524 : vector<8xf32> to vector<8x1xf32>
    %526 = arith.mulf %15, %22 : vector<8x32xf32>
    %cst_89 = arith.constant dense<0.000000e+00> : vector<8xf32>
    %527 = vector.multi_reduction <add>, %526, %cst_89 [1] : vector<8x32xf32> to vector<8xf32>
    %528 = vector.shape_cast %527 : vector<8xf32> to vector<8x1xf32>
    %529 = arith.mulf %15, %23 : vector<8x32xf32>
    %cst_90 = arith.constant dense<0.000000e+00> : vector<8xf32>
    %530 = vector.multi_reduction <add>, %529, %cst_90 [1] : vector<8x32xf32> to vector<8xf32>
    %531 = vector.shape_cast %530 : vector<8xf32> to vector<8x1xf32>
    %532 = tpu.concatenate %510, %513, %516, %519, %522, %525, %528, %531 in 1 : vector<8x1xf32>, vector<8x1xf32>, vector<8x1xf32>, vector<8x1xf32>, vector<8x1xf32>, vector<8x1xf32>, vector<8x1xf32>, vector<8x1xf32> -> vector<8x8xf32>
    %cst_91 = arith.constant dense<0xFF800000> : vector<8xf32>
    %533 = vector.multi_reduction <maximumf>, %532, %cst_91 [1] : vector<8x8xf32> to vector<8xf32>
    %534 = vector.shape_cast %533 : vector<8xf32> to vector<8x1xf32>
    %535 = vector.broadcast %534 : vector<8x1xf32> to vector<8x8xf32>
    %536 = arith.subf %532, %535 : vector<8x8xf32>
    %537 = math.exp %536 : vector<8x8xf32>
    %cst_92 = arith.constant dense<0.000000e+00> : vector<8xf32>
    %538 = vector.multi_reduction <add>, %537, %cst_92 [1] : vector<8x8xf32> to vector<8xf32>
    %539 = vector.shape_cast %538 : vector<8xf32> to vector<8x1xf32>
    %cst_93 = arith.constant 1.000000e+00 : f32
    %540 = vector.broadcast %cst_93 : f32 to vector<8x1xf32>
    %541 = arith.divf %540, %539 : vector<8x1xf32>
    %542 = vector.broadcast %541 : vector<8x1xf32> to vector<8x8xf32>
    %543 = arith.mulf %537, %542 : vector<8x8xf32>
    %544 = vector.extract_strided_slice %543 {offsets = [0, 0], sizes = [8, 1], strides = [1, 1]} : vector<8x8xf32> to vector<8x1xf32>
    %545 = vector.broadcast %544 : vector<8x1xf32> to vector<8x16xf32>
    %546 = arith.mulf %545, %24 : vector<8x16xf32>
    %547 = vector.extract_strided_slice %543 {offsets = [0, 1], sizes = [8, 1], strides = [1, 1]} : vector<8x8xf32> to vector<8x1xf32>
    %548 = vector.broadcast %547 : vector<8x1xf32> to vector<8x16xf32>
    %549 = arith.mulf %548, %25 : vector<8x16xf32>
    %550 = arith.addf %546, %549 : vector<8x16xf32>
    %551 = vector.extract_strided_slice %543 {offsets = [0, 2], sizes = [8, 1], strides = [1, 1]} : vector<8x8xf32> to vector<8x1xf32>
    %552 = vector.broadcast %551 : vector<8x1xf32> to vector<8x16xf32>
    %553 = arith.mulf %552, %26 : vector<8x16xf32>
    %554 = arith.addf %550, %553 : vector<8x16xf32>
    %555 = vector.extract_strided_slice %543 {offsets = [0, 3], sizes = [8, 1], strides = [1, 1]} : vector<8x8xf32> to vector<8x1xf32>
    %556 = vector.broadcast %555 : vector<8x1xf32> to vector<8x16xf32>
    %557 = arith.mulf %556, %27 : vector<8x16xf32>
    %558 = arith.addf %554, %557 : vector<8x16xf32>
    %559 = vector.extract_strided_slice %543 {offsets = [0, 4], sizes = [8, 1], strides = [1, 1]} : vector<8x8xf32> to vector<8x1xf32>
    %560 = vector.broadcast %559 : vector<8x1xf32> to vector<8x16xf32>
    %561 = arith.mulf %560, %28 : vector<8x16xf32>
    %562 = arith.addf %558, %561 : vector<8x16xf32>
    %563 = vector.extract_strided_slice %543 {offsets = [0, 5], sizes = [8, 1], strides = [1, 1]} : vector<8x8xf32> to vector<8x1xf32>
    %564 = vector.broadcast %563 : vector<8x1xf32> to vector<8x16xf32>
    %565 = arith.mulf %564, %29 : vector<8x16xf32>
    %566 = arith.addf %562, %565 : vector<8x16xf32>
    %567 = vector.extract_strided_slice %543 {offsets = [0, 6], sizes = [8, 1], strides = [1, 1]} : vector<8x8xf32> to vector<8x1xf32>
    %568 = vector.broadcast %567 : vector<8x1xf32> to vector<8x16xf32>
    %569 = arith.mulf %568, %30 : vector<8x16xf32>
    %570 = arith.addf %566, %569 : vector<8x16xf32>
    %571 = vector.extract_strided_slice %543 {offsets = [0, 7], sizes = [8, 1], strides = [1, 1]} : vector<8x8xf32> to vector<8x1xf32>
    %572 = vector.broadcast %571 : vector<8x1xf32> to vector<8x16xf32>
    %573 = arith.mulf %572, %31 : vector<8x16xf32>
    %574 = arith.addf %570, %573 : vector<8x16xf32>
    %575 = arith.addf %31, %574 : vector<8x16xf32>
    %576 = tpu.concatenate %99, %167, %235, %303, %371, %439, %507, %575 in 1 : vector<8x16xf32>, vector<8x16xf32>, vector<8x16xf32>, vector<8x16xf32>, vector<8x16xf32>, vector<8x16xf32>, vector<8x16xf32>, vector<8x16xf32> -> vector<8x128xf32>
    %c0_94 = arith.constant 0 : index
    %c0_95 = arith.constant 0 : index
    %577 = vector.load %arg4[%c0_94, %c0_95] : memref<8x128xf32, #tpu.memory_space<vmem>>, vector<8x128xf32>
    tpu.vector_store %arg4[%c0_94, %c0_95], %576 {strides = array<i32>} : memref<8x128xf32, #tpu.memory_space<vmem>>, vector<8x128xf32>,
    %578 = tpu.concatenate %67, %135, %203, %271, %339, %407, %475, %543 in 1 : vector<8x8xf32>, vector<8x8xf32>, vector<8x8xf32>, vector<8x8xf32>, vector<8x8xf32>, vector<8x8xf32>, vector<8x8xf32>, vector<8x8xf32> -> vector<8x64xf32>
    %c0_96 = arith.constant 0 : index
    %c0_97 = arith.constant 0 : index
    %579 = vector.load %arg5[%c0_96, %c0_97] : memref<8x64xf32, #tpu.memory_space<vmem>>, vector<8x64xf32>
    tpu.vector_store %arg5[%c0_96, %c0_97], %578 {strides = array<i32>} : memref<8x64xf32, #tpu.memory_space<vmem>>, vector<8x64xf32>,
    return
  }
  func.func @transform_0(%arg0: i32) -> (i32, i32) {
    %c0_i32 = arith.constant 0 : i32
    %c0_i32_0 = arith.constant 0 : i32
    return %arg0, %c0_i32 : i32, i32
  }
  func.func @transform_1(%arg0: i32) -> (i32, i32) {
    %c0_i32 = arith.constant 0 : i32
    %c0_i32_0 = arith.constant 0 : i32
    %c0_i32_1 = arith.constant 0 : i32
    return %c0_i32, %c0_i32_0 : i32, i32
  }
  func.func @transform_2(%arg0: i32) -> (i32, i32) {
    %c0_i32 = arith.constant 0 : i32
    %c0_i32_0 = arith.constant 0 : i32
    %c0_i32_1 = arith.constant 0 : i32
    return %c0_i32, %c0_i32_0 : i32, i32
  }
  func.func @transform_3(%arg0: i32) -> (i32, i32) {
    %c0_i32 = arith.constant 0 : i32
    %c0_i32_0 = arith.constant 0 : i32
    return %arg0, %c0_i32 : i32, i32
  }
  func.func @transform_4(%arg0: i32) -> (i32, i32) {
    %c0_i32 = arith.constant 0 : i32
    %c0_i32_0 = arith.constant 0 : i32
    return %arg0, %c0_i32 : i32, i32
  }
}

</mosaic_0001>

<bundles_post_ra>
// kernel: tpu_custom_call.1
= control target key start
LH: loop header
LB: loop body
LE: loop exit
PB: predicated region body
PF: predicated region fallthrough
CT: control target
= control target key end

     0   :  { %10 = vsyncpa [#allocation3], 0  ;;  %s2693_s0 = inlined_call_operand.hbm [shape: f32[8,128], index: 0, kind: input, shape index: {}]   ;;  %s2694_s1 = inlined_call_operand.hbm [shape: f32[128,512], index: 1, kind: input, shape index: {}]   ;;  %s2695_s2 = inlined_call_operand.hbm [shape: f32[1,512], index: 2, kind: input, shape index: {}]   ;;  %s2696_s3 = inlined_call_operand.hbm [shape: f32[8,128], index: 3, kind: output, shape index: {0}]   ;;  %s2697_s4 = inlined_call_operand.hbm [shape: f32[8,64], index: 4, kind: output, shape index: {1}]  }
   0x1   :  { %11 = vsyncpa [#allocation6], 0 }
   0x2   :  { %12 = vsyncpa [#allocation4], 0 }
   0x3   :  { %13 = vsyncpa [#allocation10], 0  ;;  %s1783_s15 = smov [#allocation5]  }
   0x4   :  { %s29_s16 = sshll.u32 %s1783_s15, 4  ;;  %s30_s16 = int_to_ptr.vmem [resolvable:$true] %s29_s16 }
   0x5   :  { %s1683_s17 = scalar_lea.vmem %s30_s16, 8192  ;;  %p1688_p1 = scmp.lt.s32.totalorder %s30_s16, %s30_s16 }
   0x6   :  { %p1684_p0 = scmp.ne.s32.totalorder %s30_s16, %s1683_s17  ;;  %p1689_p2 = scmp.lt.s32.totalorder %s1683_s17, %s1683_s17 }
   0x8   :  { %p1690_p3 = por %p1689_p2, %p1688_p1 }
   0xa   :  { %p1691_p4 = pnand %p1690_p3, %p1684_p0 }
   0xc   :  { %1694 = shalt.err (!%p1691_p4)
}
   0xd   :  { %s1784_s18 = smov 512   ;;  %s1785_s19 = smov 32  }
   0xe   :  { %35 = dma.hbm_to_vmem [thread:$0]  %s2694_s1, 8192, %s30_s16, [#allocation6], %s1784_s18, %s1784_s18, %s1785_s19  }
   0xf   :  { %s1786_s22 = smov [#allocation2]   ;;  %s1787_s24 = smov [#allocation7]  }
  0x10   :  { %s20_s23 = sshll.u32 %s1786_s22, 4  ;;  %s42_s25 = sshll.u32 %s1787_s24, 4  ;;  %s21_s23 = int_to_ptr.vmem [resolvable:$true] %s20_s23  ;;  %s43_s25 = int_to_ptr.vmem [resolvable:$true] %s42_s25 }
  0x11   :  { %s1703_s26 = scalar_lea.vmem %s21_s23, 128  ;;  %p1708_p6 = scmp.lt.s32.totalorder %s21_s23, %s21_s23 }
  0x12   :  { %p1704_p5 = scmp.ne.s32.totalorder %s21_s23, %s1703_s26  ;;  %p1709_p7 = scmp.lt.s32.totalorder %s1703_s26, %s1703_s26 }
  0x14   :  { %p1710_p8 = por %p1709_p7, %p1708_p6 }
  0x16   :  { %p1711_p9 = pnand %p1710_p8, %p1704_p5 }
  0x18   :  { %1714 = shalt.err (!%p1711_p9)
}
  0x19   :  { %23 = dma.hbm_to_vmem [thread:$0]  %s2693_s0, 128, %s21_s23, [#allocation3]  }
  0x1a   :  { %s1723_s29 = scalar_lea.vmem %s43_s25, 64  ;;  %p1728_p11 = scmp.lt.s32.totalorder %s43_s25, %s43_s25 }
  0x1b   :  { %p1724_p10 = scmp.ne.s32.totalorder %s43_s25, %s1723_s29  ;;  %p1729_p12 = scmp.lt.s32.totalorder %s1723_s29, %s1723_s29 }
  0x1d   :  { %p1730_p13 = por %p1729_p12, %p1728_p11 }
  0x1f   :  { %p1731_p0 = pnand %p1730_p13, %p1724_p10 }
  0x21   :  { %1734 = shalt.err (!%p1731_p0)
}
  0x22   :  { %45 = dma.hbm_to_vmem [thread:$0]  %s2695_s2, 64, %s43_s25, [#allocation6]  }
  0x23   :  { %1775 = dma.done.wait [#allocation3], 128  }
  0x24   :  { %1776 = vsyncadd [#allocation3], 4294967168 }
  0x25   :  { %1777 = dma.done.wait [#allocation6], 8256  }
  0x26   :  { %1778 = vsyncadd [#allocation6], 4294959040  ;;  %v1788_v0 = vmov 0.0   ;;  %v117_v1 = vld [vmem:[#allocation5 + $0x1e8] sm:$0xff]  ;;  %v119_v2 = vld [vmem:[#allocation5 + $0x1f8] sm:$0xff]  ;;  %s1789_s0 = smov 64  }
  0x27   :  { %206 = vmatprep.mubr.f32.mxu0 %v1788_v0  ;;  %277 = vmatprep.mubr.f32.mxu1 %v1788_v0  ;;  %v116_v3 = vld [vmem:[#allocation5 + $0x1e0] sm:$0xff]  ;;  %v118_v4 = vld [vmem:[#allocation5 + $0x1f0] sm:$0xff]  ;;  %v113_v5 = vld [vmem:[#allocation5 + $0x1c8] sm:$0xff]  ;;  %s1790_s2 = smov 96   ;;  %vm289_vm0 = vcmask 261120   ;;  %vm341_vm1 = vcmask 7168  }
  0x28   :  { %142 = vmatprep.subr.mxu0 %v117_v1  ;;  %213 = vmatprep.subr.mxu1 %v119_v2  ;;  %v115_v6 = vld [vmem:[#allocation5 + $0x1d8] sm:$0xff]  ;;  %v112_v7 = vld [vmem:[#allocation5 + $0x1c0] sm:$0xff]  ;;  %v114_v8 = vld [vmem:[#allocation5 + $0x1d0] sm:$0xff]  ;;  %v122_v2 = vlaneseq  ;;  %vm343_vm2 = vcmask 15360   ;;  %vm345_vm3 = vcmask 23552   ;;  %vm347_vm4 = vcmask 31744  }
  0x29   :  { %143 = vmatpush1.msra.mxu0 %v116_v3  ;;  %214 = vmatpush1.msra.mxu1 %v118_v4  ;;  %v109_v9 = vld [vmem:[#allocation5 + $0x1a8] sm:$0xff]  ;;  %v111_v10 = vld [vmem:[#allocation5 + $0x1b8] sm:$0xff]  ;;  %v108_v11 = vld [vmem:[#allocation5 + $0x1a0] sm:$0xff]  ;;  %vm349_vm5 = vcmask 39936   ;;  %vm351_vm6 = vcmask 48128   ;;  %vm353_vm7 = vcmask 56320  }
  0x2a   :  { %144 = vmatprep.subr.mxu0 %v113_v5  ;;  %215 = vmatprep.subr.mxu1 %v115_v6  ;;  %v110_v12 = vld [vmem:[#allocation5 + $0x1b0] sm:$0xff]  ;;  %v105_v13 = vld [vmem:[#allocation5 + $0x188] sm:$0xff]  ;;  %v107_v14 = vld [vmem:[#allocation5 + $0x198] sm:$0xff]  ;;  %v1848_v3 = vshrl.u32 %v122_v2, 7  ;;  %vm355_vm8 = vcmask 64512   ;;  %s1799_s5 = smov 16  }
  0x2b   :  { %145 = vmatpush1.msra.mxu0 %v112_v7  ;;  %216 = vmatpush1.msra.mxu1 %v114_v8  ;;  %v104_v15 = vld [vmem:[#allocation5 + $0x180] sm:$0xff]  ;;  %v106_v16 = vld [vmem:[#allocation5 + $0x190] sm:$0xff]  ;;  %v101_v17 = vld [vmem:[#allocation5 + $0x168] sm:$0xff]  ;;  %s1800_s6 = smov 80   ;;  %s1801_s7 = smov 48   ;;  %vm1481_vm9 = vcmask 130048  }
  0x2c   :  { %146 = vmatprep.subr.mxu0 %v109_v9  ;;  %217 = vmatprep.subr.mxu1 %v111_v10  ;;  %v103_v18 = vld [vmem:[#allocation5 + $0x178] sm:$0xff]  ;;  %v100_v19 = vld [vmem:[#allocation5 + $0x160] sm:$0xff]  ;;  %v102_v20 = vld [vmem:[#allocation5 + $0x170] sm:$0xff]  ;;  %v132_v4 = vsub.s32 2, %v1848_v3  ;;  %v124_v6 = vsub.s32 0, %v1848_v3  ;;  %v136_v7 = vsub.s32 3, %v1848_v3 }
  0x2d   :  { %147 = vmatpush1.msra.mxu0 %v108_v11  ;;  %218 = vmatpush1.msra.mxu1 %v110_v12  ;;  %v97_v21 = vld [vmem:[#allocation5 + $0x148] sm:$0xff]  ;;  %v99_v22 = vld [vmem:[#allocation5 + $0x158] sm:$0xff]  ;;  %v96_v23 = vld [vmem:[#allocation5 + $0x140] sm:$0xff]  ;;  %s1802_s8 = smov 112   ;;  %vm1484_vm10 = vcmask 392192   ;;  %vm1486_vm11 = vcmask 523264  }
  0x2e   :  { %148 = vmatprep.subr.mxu0 %v105_v13  ;;  %219 = vmatprep.subr.mxu1 %v107_v14  ;;  %v98_v24 = vld [vmem:[#allocation5 + $0x150] sm:$0xff]  ;;  %v93_v25 = vld [vmem:[#allocation5 + $0x128] sm:$0xff]  ;;  %v95_v26 = vld [vmem:[#allocation5 + $0x138] sm:$0xff]  ;;  %vm1488_vm12 = vcmask 654336   ;;  %vm1490_vm13 = vcmask 785408   ;;  %s1803_s9 = smov 8  }
  0x2f   :  { %149 = vmatpush1.msra.mxu0 %v104_v15  ;;  %220 = vmatpush1.msra.mxu1 %v106_v16  ;;  %v92_v27 = vld [vmem:[#allocation5 + $0x120] sm:$0xff]  ;;  %v94_v28 = vld [vmem:[#allocation5 + $0x130] sm:$0xff]  ;;  %v89_v29 = vld [vmem:[#allocation5 + $0x108] sm:$0xff]  ;;  %s1804_s10 = smov 24   ;;  %s1805_s11 = smov 40   ;;  %vm1492_vm14 = vcmask 916480  }
  0x30   :  { %150 = vmatprep.subr.mxu0 %v101_v17  ;;  %221 = vmatprep.subr.mxu1 %v103_v18  ;;  %v91_v30 = vld [vmem:[#allocation5 + $0x118] sm:$0xff]  ;;  %v88_v31 = vld [vmem:[#allocation5 + $0x100] sm:$0xff]  ;;  %v90_v32 = vld [vmem:[#allocation5 + $0x110] sm:$0xff]  ;;  %s1806_s12 = smov 56   ;;  %s1807_s13 = smov [#allocation8]   ;;  %vm1518_vm15 = vcmask 195584  }
  0x31   :  { %151 = vmatpush1.msra.mxu0 %v100_v19  ;;  %222 = vmatpush1.msra.mxu1 %v102_v20  ;;  %v85_v33 = vld [vmem:[#allocation5 + $0xe8] sm:$0xff]  ;;  %v87_v34 = vld [vmem:[#allocation5 + $0xf8] sm:$0xff]  ;;  %v84_v35 = vld [vmem:[#allocation5 + $0xe0] sm:$0xff]  ;;  %s1533_s14 = sshll.u32 %s1807_s13, 4  ;;  %s1534_s14 = int_to_ptr.vmem [resolvable:$true] %s1533_s14 }
  0x32   :  { %152 = vmatprep.subr.mxu0 %v97_v21  ;;  %223 = vmatprep.subr.mxu1 %v99_v22  ;;  %v86_v36 = vld [vmem:[#allocation5 + $0xf0] sm:$0xff]  ;;  %v81_v37 = vld [vmem:[#allocation5 + $0xc8] sm:$0xff]  ;;  %v83_v38 = vld [vmem:[#allocation5 + $0xd8] sm:$0xff]  ;;  %s1735_s15 = scalar_lea.vmem %s1534_s14, 128  ;;  %p1740_p2 = scmp.lt.s32.totalorder %s1534_s14, %s1534_s14 }
  0x33   :  { %153 = vmatpush1.msra.mxu0 %v96_v23  ;;  %224 = vmatpush1.msra.mxu1 %v98_v24  ;;  %v80_v39 = vld [vmem:[#allocation5 + $0xc0] sm:$0xff]  ;;  %v82_v40 = vld [vmem:[#allocation5 + $0xd0] sm:$0xff]  ;;  %v77_v41 = vld [vmem:[#allocation5 + $0xa8] sm:$0xff]  ;;  %p1736_p1 = scmp.ne.s32.totalorder %s1534_s14, %s1735_s15  ;;  %p1741_p3 = scmp.lt.s32.totalorder %s1735_s15, %s1735_s15 }
  0x34   :  { %154 = vmatprep.subr.mxu0 %v93_v25  ;;  %225 = vmatprep.subr.mxu1 %v95_v26  ;;  %v79_v42 = vld [vmem:[#allocation5 + $0xb8] sm:$0xff]  ;;  %v76_v43 = vld [vmem:[#allocation5 + $0xa0] sm:$0xff]  ;;  %v78_v44 = vld [vmem:[#allocation5 + $0xb0] sm:$0xff] }
  0x35   :  { %155 = vmatpush1.msra.mxu0 %v92_v27  ;;  %226 = vmatpush1.msra.mxu1 %v94_v28  ;;  %v73_v45 = vld [vmem:[#allocation5 + $0x88] sm:$0xff]  ;;  %v75_v46 = vld [vmem:[#allocation5 + $0x98] sm:$0xff]  ;;  %v72_v47 = vld [vmem:[#allocation5 + $0x80] sm:$0xff]  ;;  %p1742_p4 = por %p1741_p3, %p1740_p2 }
  0x36   :  { %156 = vmatprep.subr.mxu0 %v89_v29  ;;  %227 = vmatprep.subr.mxu1 %v91_v30  ;;  %v74_v48 = vld [vmem:[#allocation5 + $0x90] sm:$0xff]  ;;  %v69_v49 = vld [vmem:[#allocation5 + $0x68] sm:$0xff]  ;;  %v71_v50 = vld [vmem:[#allocation5 + $0x78] sm:$0xff] }
  0x37   :  { %157 = vmatpush1.msra.mxu0 %v88_v31  ;;  %228 = vmatpush1.msra.mxu1 %v90_v32  ;;  %v68_v51 = vld [vmem:[#allocation5 + $0x60] sm:$0xff]  ;;  %v70_v52 = vld [vmem:[#allocation5 + $0x70] sm:$0xff]  ;;  %v65_v53 = vld [vmem:[#allocation5 + $0x48] sm:$0xff]  ;;  %p1743_p5 = pnand %p1742_p4, %p1736_p1 }
  0x38   :  { %158 = vmatprep.subr.mxu0 %v85_v33  ;;  %229 = vmatprep.subr.mxu1 %v87_v34  ;;  %v67_v54 = vld [vmem:[#allocation5 + $0x58] sm:$0xff]  ;;  %v64_v55 = vld [vmem:[#allocation5 + $0x40] sm:$0xff]  ;;  %v66_v56 = vld [vmem:[#allocation5 + $0x50] sm:$0xff] }
  0x39   :  { %159 = vmatpush1.msra.mxu0 %v84_v35  ;;  %230 = vmatpush1.msra.mxu1 %v86_v36  ;;  %v61_v57 = vld [vmem:[#allocation5 + $0x28] sm:$0xff]  ;;  %v63_v58 = vld [vmem:[#allocation5 + $0x38] sm:$0xff]  ;;  %v60_v59 = vld [vmem:[#allocation5 + $0x20] sm:$0xff] }
  0x3a   :  { %160 = vmatprep.subr.mxu0 %v81_v37  ;;  %231 = vmatprep.subr.mxu1 %v83_v38  ;;  %v62_v60 = vld [vmem:[#allocation5 + $0x30] sm:$0xff]  ;;  %v57_v61 = vld [vmem:[#allocation5 + $0x8] sm:$0xff]  ;;  %v59_v62 = vld [vmem:[#allocation5 + $0x18] sm:$0xff] }
  0x3b   :  { %161 = vmatpush1.msra.mxu0 %v80_v39  ;;  %232 = vmatpush1.msra.mxu1 %v82_v40  ;;  %v56_v63 = vld [vmem:[#allocation5] sm:$0xff]  ;;  %v58_v0 = vld [vmem:[#allocation5 + $0x10] sm:$0xff]  ;;  %v1844_v1 = vld [vmem:[#allocation2] sm:$0xff] }
  0x3c   :  { %162 = vmatprep.subr.mxu0 %v77_v41  ;;  %233 = vmatprep.subr.mxu1 %v79_v42  ;;  %v1851_v5 = vld [vmem:[#allocation7] sm:$0xf] }
  0x3d   :  { %163 = vmatpush1.msra.mxu0 %v76_v43  ;;  %234 = vmatpush1.msra.mxu1 %v78_v44  ;;  %v133_v8 = vrot.slane %v1851_v5, %v132_v4  ;;  %v125_v9 = vrot.slane %v1851_v5, %v124_v6  ;;  %v137_v10 = vrot.slane %v1851_v5, %v136_v7 }
  0x3e   :  { %164 = vmatprep.subr.mxu0 %v73_v45  ;;  %235 = vmatprep.subr.mxu1 %v75_v46 }
  0x3f   :  { %165 = vmatpush1.msra.mxu0 %v72_v47  ;;  %236 = vmatpush1.msra.mxu1 %v74_v48 }
  0x40   :  { %166 = vmatprep.subr.mxu0 %v69_v49  ;;  %237 = vmatprep.subr.mxu1 %v71_v50 }
  0x41   :  { %167 = vmatpush1.msra.mxu0 %v68_v51  ;;  %238 = vmatpush1.msra.mxu1 %v70_v52 }
  0x42   :  { %168 = vmatprep.subr.mxu0 %v65_v53  ;;  %239 = vmatprep.subr.mxu1 %v67_v54 }
  0x43   :  { %169 = vmatpush1.msra.mxu0 %v64_v55  ;;  %240 = vmatpush1.msra.mxu1 %v66_v56 }
  0x44   :  { %170 = vmatprep.subr.mxu0 %v61_v57  ;;  %241 = vmatprep.subr.mxu1 %v63_v58 }
  0x45   :  { %171 = vmatpush1.msra.mxu0 %v60_v59  ;;  %242 = vmatpush1.msra.mxu1 %v62_v60 }
  0x46   :  { %172 = vmatprep.subr.mxu0 %v57_v61  ;;  %243 = vmatprep.subr.mxu1 %v59_v62 }
  0x47   :  { %173 = vmatpush1.msra.mxu0 %v56_v63  ;;  %244 = vmatpush1.msra.mxu1 %v58_v0 }
  0x48   :  { %207 = vmatmul.mubr.f32.vlgmr.msra.gmra.mxu0 %v1844_v1  ;;  %278 = vmatmul.mubr.f32.vlgmr.msra.gmra.mxu1 %v1844_v1 }
 0x108   :  { %v208_v11 = vpop.f32.mrf.mxu0  ;;  %v279_v12 = vpop.f32.mrf.mxu1 }
 0x109   :  { %v280_v13 = vadd.f32 %v279_v12, %v133_v8  ;;  %v209_v15 = vadd.f32 %v208_v11, %v125_v9 }
 0x10a   :  { %v281_v14 = vpop.f32.mrf.mxu1 }
 0x10b   :  { %v1858_v16 = vmax.f32 %v280_v13, 0.0  ;;  %v282_v17 = vadd.f32 %v281_v14, %v137_v10  ;;  %v284_v18 = vmax.f32 %v209_v15, 0.0 }
 0x10d   :  { %301 = vrot.lane.b32.xlu1 %v1858_v16, %s1789_s0  ;;  %294 = vrot.lane.b32.xlu0 %v1858_v16, %s1790_s2  ;;  %v1864_v19 = vmax.f32 %v282_v17, 0.0  ;;  %v288_v20 = vmul.f32 %v1858_v16, %v284_v18 }
 0x10f   :  { %v1879_v21 = vmul.f32 %v1864_v19, %v284_v18  ;;  %v290_v22 = vsel %vm289_vm0, %v288_v20, 0.0 }
 0x111   :  { %327 = vrot.lane.b32.xlu1 %v1864_v19, %s1789_s0  ;;  %308 = vrot.lane.b32.xlu0 %v1858_v16, %s1785_s19  ;;  %v316_v23 = vsel %vm289_vm0, %v1879_v21, 0.0 }
 0x115   :  { %320 = vrot.lane.b32.xlu0 %v1864_v19, %s1790_s2  ;;  %453 = vrot.lane.b32.xlu1 %v288_v20, %s1790_s2 }
 0x119   :  { %334 = vrot.lane.b32.xlu0 %v1864_v19, %s1785_s19  ;;  %613 = vrot.lane.b32.xlu1 %v288_v20, %s1789_s0 }
 0x11d   :  { %767 = vrot.lane.b32.xlu0 %v288_v20, %s1785_s19 }
 0x13c   :  { %291 = vadd.xlane.f32.xlu0 %v290_v22 }
 0x13d   :  { %317 = vadd.xlane.f32.xlu1 %v316_v23 }
 0x152   :  { %481 = vrot.lane.b32.xlu0 %v1879_v21, %s1790_s2 }
 0x156   :  { %637 = vrot.lane.b32.xlu0 %v1879_v21, %s1789_s0 }
 0x17f   :  { %v1888_v24 = vpop.permute.xlu0 %294  ;;  %v1891_v26 = vpop.permute.xlu1 %301 }
 0x180   :  { %v297_v25 = vmul.f32 %v1888_v24, %v284_v18  ;;  %v304_v28 = vmul.f32 %v1891_v26, %v284_v18 }
 0x182   :  { %460 = vrot.lane.b32.xlu0 %v297_v25, %s1790_s2  ;;  %v298_v33 = vsel %vm289_vm0, %v297_v25, 0.0  ;;  %v305_v37 = vsel %vm289_vm0, %v304_v28, 0.0 }
 0x183   :  { %v1894_v27 = vpop.permute.xlu0 %308  ;;  %v1906_v30 = vpop.permute.xlu1 %327 }
 0x184   :  { %v311_v29 = vmul.f32 %v1894_v27, %v284_v18  ;;  %v1926_v44 = vmul.f32 %v1906_v30, %v284_v18 }
 0x186   :  { %446 = vrot.lane.b32.xlu1 %v311_v29, %s1790_s2  ;;  %601 = vrot.lane.b32.xlu0 %v304_v28, %s1789_s0  ;;  %v312_v35 = vsel %vm289_vm0, %v311_v29, 0.0  ;;  %v331_v52 = vsel %vm289_vm0, %v1926_v44, 0.0 }
 0x187   :  { %v1908_v31 = vpop.permute.xlu0 %320  ;;  %v454_v32 = vpop.permute.xlu1 %453 }
 0x188   :  { %v456_v39 = vsel %vm289_vm0, %v454_v32, 0.0  ;;  %v323_v42 = vmul.f32 %v1908_v31, %v284_v18 }
 0x18a   :  { %467 = vrot.lane.b32.xlu1 %v304_v28, %s1790_s2  ;;  %607 = vrot.lane.b32.xlu0 %v311_v29, %s1789_s0  ;;  %v324_v49 = vsel %vm289_vm0, %v323_v42, 0.0 }
 0x18b   :  { %v1911_v34 = vpop.permute.xlu0 %334  ;;  %v614_v36 = vpop.permute.xlu1 %613 }
 0x18c   :  { %v616_v38 = vsel %vm289_vm0, %v614_v36, 0.0  ;;  %v1920_v43 = vmul.f32 %v1911_v34, %v284_v18 }
 0x18e   :  { %761 = vrot.lane.b32.xlu1 %v311_v29, %s1785_s19  ;;  %619 = vrot.lane.b32.xlu0 %v297_v25, %s1789_s0  ;;  %v338_v55 = vsel %vm289_vm0, %v1920_v43, 0.0 }
 0x18f   :  { %v768_v40 = vpop.permute.xlu0 %767 }
 0x190   :  { %v770_v41 = vsel %vm289_vm0, %v768_v40, 0.0 }
 0x192   :  { %749 = vrot.lane.b32.xlu0 %v297_v25, %s1785_s19 }
 0x196   :  { %755 = vrot.lane.b32.xlu0 %v304_v28, %s1785_s19 }
 0x1b2   :  { %299 = vadd.xlane.f32.xlu1 %v298_v33 }
 0x1b5   :  { %313 = vadd.xlane.f32.xlu0 %v312_v35 }
 0x1b6   :  { %306 = vadd.xlane.f32.xlu1 %v305_v37 }
 0x1b9   :  { %617 = vadd.xlane.f32.xlu0 %v616_v38 }
 0x1ba   :  { %457 = vadd.xlane.f32.xlu1 %v456_v39 }
 0x1be   :  { %771 = vadd.xlane.f32.xlu1 %v770_v41 }
 0x1c5   :  { %v1936_v45 = vpop.xlane.xlu0 %291 }
 0x1c6   :  { %v1939_v50 = vpop.xlane.xlu1 %317 }
 0x1c9   :  { %v482_v46 = vpop.permute.xlu0 %481 }
 0x1ca   :  { %v484_v56 = vsel %vm289_vm0, %v482_v46, 0.0 }
 0x1cd   :  { %v638_v47 = vpop.permute.xlu0 %637 }
 0x1ce   :  { %v640_v60 = vsel %vm289_vm0, %v638_v47, 0.0 }
 0x1cf   :  { %474 = vrot.lane.b32.xlu1 %v1920_v43, %s1790_s2  ;;  %488 = vrot.lane.b32.xlu0 %v323_v42, %s1790_s2 }
 0x1d3   :  { %631 = vrot.lane.b32.xlu1 %v1920_v43, %s1789_s0  ;;  %495 = vrot.lane.b32.xlu0 %v1926_v44, %s1790_s2 }
 0x1d7   :  { %625 = vrot.lane.b32.xlu0 %v1926_v44, %s1789_s0 }
 0x1db   :  { %643 = vrot.lane.b32.xlu0 %v323_v42, %s1789_s0 }
 0x1df   :  { %773 = vrot.lane.b32.xlu0 %v323_v42, %s1785_s19 }
 0x1f4   :  { %v461_v48 = vpop.permute.xlu0 %460 }
 0x1f5   :  { %v463_v63 = vsel %vm289_vm0, %v461_v48, 0.0 }
 0x1f7   :  { %325 = vadd.xlane.f32.xlu1 %v324_v49 }
 0x1f8   :  { %v602_v51 = vpop.permute.xlu0 %601  ;;  %v447_v53 = vpop.permute.xlu1 %446 }
 0x1f9   :  { %v449_v58 = vsel %vm289_vm0, %v447_v53, 0.0  ;;  %v604_v4 = vsel %vm289_vm0, %v602_v51, 0.0 }
 0x1fb   :  { %332 = vadd.xlane.f32.xlu1 %v331_v52 }
 0x1fc   :  { %v608_v54 = vpop.permute.xlu0 %607  ;;  %v468_v59 = vpop.permute.xlu1 %467 }
 0x1fd   :  { %v470_v62 = vsel %vm289_vm0, %v468_v59, 0.0  ;;  %v610_v0 = vsel %vm289_vm0, %v608_v54, 0.0 }
 0x1fe   :  { %339 = vadd.xlane.f32.xlu0 %v338_v55 }
 0x1ff   :  { %485 = vadd.xlane.f32.xlu1 %v484_v56 }
 0x200   :  { %v620_v57 = vpop.permute.xlu0 %619  ;;  %v762_v7 = vpop.permute.xlu1 %761 }
 0x201   :  { %v622_v8 = vsel %vm289_vm0, %v620_v57, 0.0  ;;  %v764_v9 = vsel %vm289_vm0, %v762_v7, 0.0 }
 0x202   :  { %450 = vadd.xlane.f32.xlu0 %v449_v58 }
 0x203   :  { %641 = vadd.xlane.f32.xlu1 %v640_v60 }
 0x204   :  { %v750_v61 = vpop.permute.xlu0 %749 }
 0x205   :  { %v752_v10 = vsel %vm289_vm0, %v750_v61, 0.0 }
 0x206   :  { %471 = vadd.xlane.f32.xlu0 %v470_v62 }
 0x207   :  { %464 = vadd.xlane.f32.xlu1 %v463_v63 }
 0x208   :  { %v756_v2 = vpop.permute.xlu0 %755 }
 0x209   :  { %v758_v6 = vsel %vm289_vm0, %v756_v2, 0.0 }
 0x20a   :  { %611 = vadd.xlane.f32.xlu0 %v610_v0 }
 0x20b   :  { %605 = vadd.xlane.f32.xlu1 %v604_v4 }
 0x20e   :  { %759 = vadd.xlane.f32.xlu0 %v758_v6 }
 0x20f   :  { %623 = vadd.xlane.f32.xlu1 %v622_v8 }
 0x212   :  { %765 = vadd.xlane.f32.xlu0 %v764_v9 }
 0x213   :  { %753 = vadd.xlane.f32.xlu1 %v752_v10  ;;  %v128_v10 = vsub.s32 1, %v1848_v3 }
 0x23b   :  { %v300_v11 = vpop.xlane.xlu1 %299 }
 0x23c   :  { %v342_v53 = vsel %vm341_vm1, %v1936_v45, %v300_v11  ;;  %v210_v11 = vpop.f32.mrf.mxu0 }
 0x23e   :  { %v314_v12 = vpop.xlane.xlu0 %313 }
 0x23f   :  { %v307_v13 = vpop.xlane.xlu1 %306 }
 0x240   :  { %v344_v54 = vsel %vm343_vm2, %v342_v53, %v307_v13 }
 0x241   :  { %v346_v55 = vsel %vm345_vm3, %v344_v54, %v314_v12 }
 0x242   :  { %v1956_v14 = vpop.xlane.xlu0 %617  ;;  %v348_v57 = vsel %vm347_vm4, %v346_v55, %v1939_v50 }
 0x243   :  { %v1958_v15 = vpop.xlane.xlu1 %457 }
 0x246   :  { %v489_v17 = vpop.permute.xlu0 %488 }
 0x247   :  { %v1960_v18 = vpop.xlane.xlu1 %771  ;;  %v491_v32 = vsel %vm289_vm0, %v489_v17, 0.0 }
 0x24a   :  { %v496_v20 = vpop.permute.xlu0 %495 }
 0x24b   :  { %v475_v22 = vpop.permute.xlu1 %474  ;;  %v498_v36 = vsel %vm289_vm0, %v496_v20, 0.0 }
 0x24c   :  { %v477_v23 = vsel %vm289_vm0, %v475_v22, 0.0 }
 0x24d   :  { %478 = vadd.xlane.f32.xlu1 %v477_v23 }
 0x24e   :  { %v626_v25 = vpop.permute.xlu0 %625 }
 0x24f   :  { %v628_v28 = vsel %vm289_vm0, %v626_v25, 0.0  ;;  %v632_v29 = vpop.permute.xlu1 %631 }
 0x250   :  { %629 = vadd.xlane.f32.xlu0 %v628_v28  ;;  %v634_v35 = vsel %vm289_vm0, %v632_v29, 0.0 }
 0x251   :  { %492 = vadd.xlane.f32.xlu1 %v491_v32 }
 0x252   :  { %v644_v33 = vpop.permute.xlu0 %643 }
 0x253   :  { %v646_v37 = vsel %vm289_vm0, %v644_v33, 0.0 }
 0x254   :  { %635 = vadd.xlane.f32.xlu0 %v634_v35 }
 0x255   :  { %499 = vadd.xlane.f32.xlu1 %v498_v36 }
 0x256   :  { %v774_v38 = vpop.permute.xlu0 %773 }
 0x257   :  { %v776_v39 = vsel %vm289_vm0, %v774_v38, 0.0 }
 0x258   :  { %647 = vadd.xlane.f32.xlu0 %v646_v37 }
 0x25c   :  { %777 = vadd.xlane.f32.xlu0 %v776_v39 }
 0x266   :  { %779 = vrot.lane.b32.xlu1 %v1926_v44, %s1785_s19 }
 0x280   :  { %v326_v40 = vpop.xlane.xlu1 %325 }
 0x281   :  { %v350_v59 = vsel %vm349_vm5, %v348_v57, %v326_v40 }
 0x284   :  { %v333_v41 = vpop.xlane.xlu1 %332 }
 0x285   :  { %v352_v45 = vsel %vm351_vm6, %v350_v59, %v333_v41 }
 0x287   :  { %v340_v58 = vpop.xlane.xlu0 %339 }
 0x288   :  { %v1971_v42 = vpop.xlane.xlu1 %485  ;;  %v1991_v62 = vsel %vm353_vm7, %v352_v45, %v340_v58 }
 0x289   :  { %v356_v63 = vsel %vm355_vm8, %v1991_v62, -inf }
 0x28b   :  { %v451_v50 = vpop.xlane.xlu0 %450 }
 0x28c   :  { %v1973_v46 = vpop.xlane.xlu1 %641  ;;  %v501_v22 = vsel %vm341_vm1, %v451_v50, %v1958_v15 }
 0x28f   :  { %v472_v0 = vpop.xlane.xlu0 %471 }
 0x290   :  { %v465_v47 = vpop.xlane.xlu1 %464 }
 0x291   :  { %v502_v28 = vsel %vm343_vm2, %v501_v22, %v465_v47 }
 0x293   :  { %v1999_v2 = vpop.xlane.xlu0 %611 }
 0x294   :  { %v1975_v48 = vpop.xlane.xlu1 %605 }
 0x297   :  { %v2001_v4 = vpop.xlane.xlu0 %759 }
 0x298   :  { %v1977_v49 = vpop.xlane.xlu1 %623 }
 0x29b   :  { %v2003_v6 = vpop.xlane.xlu0 %765 }
 0x29c   :  { %v1979_v51 = vpop.xlane.xlu1 %753 }
 0x2d6   :  { %v479_v52 = vpop.xlane.xlu1 %478 }
 0x2d9   :  { %v2005_v7 = vpop.xlane.xlu0 %629 }
 0x2da   :  { %v493_v44 = vpop.xlane.xlu1 %492 }
 0x2dd   :  { %v2007_v8 = vpop.xlane.xlu0 %635 }
 0x2de   :  { %v500_v56 = vpop.xlane.xlu1 %499 }
 0x2e1   :  { %v2009_v9 = vpop.xlane.xlu0 %647 }
 0x2e2   :  { %v780_v60 = vpop.permute.xlu1 %779 }
 0x2e3   :  { %v782_v61 = vsel %vm289_vm0, %v780_v60, 0.0 }
 0x2e4   :  { %783 = vadd.xlane.f32.xlu0 %v782_v61 }
 0x2e8   :  { %357 = vmax.xlane.f32.xlu0 %v356_v63 }
 0x2fe   :  { %785 = vrot.lane.b32.xlu0 %v1920_v43, %s1785_s19  ;;  %v2012_v43 = vpop.xlane.xlu0 %777 }
 0x302   :  { %791 = vrot.lane.b32.xlu0 %v1879_v21, %s1785_s19  ;;  %v129_v21 = vrot.slane %v1851_v5, %v128_v10  ;;  %v503_v5 = vsel %vm345_vm3, %v502_v28, %v472_v0  ;;  %v649_v10 = vsel %vm341_vm1, %v1975_v48, %v1999_v2 }
 0x303   :  { %v504_v33 = vsel %vm347_vm4, %v503_v5, %v479_v52 }
 0x304   :  { %v211_v13 = vadd.f32 %v210_v11, %v129_v21  ;;  %v505_v36 = vsel %vm349_vm5, %v504_v33, %v1971_v42 }
 0x306   :  { %v285_v20 = vmax.f32 %v211_v13, 0.0 }
 0x308   :  { %v2020_v25 = vmul.f32 %v1888_v24, %v285_v20  ;;  %v2026_v32 = vmul.f32 %v1864_v19, %v285_v20  ;;  %v2033_v24 = vmul.f32 %v1858_v16, %v285_v20  ;;  %v2038_v37 = vmul.f32 %v1906_v30, %v285_v20 }
 0x309   :  { %v506_v19 = vsel %vm351_vm6, %v505_v36, %v493_v44  ;;  %v2049_v40 = vmul.f32 %v1891_v26, %v285_v20  ;;  %v2056_v42 = vmul.f32 %v1894_v27, %v285_v20  ;;  %v2061_v52 = vmul.f32 %v1908_v31, %v285_v20 }
 0x30a   :  { %v902_v15 = vsel %vm289_vm0, %v2020_v25, 0.0  ;;  %v914_v38 = vsel %vm289_vm0, %v2026_v32, 0.0  ;;  %v898_v39 = vsel %vm289_vm0, %v2033_v24, 0.0  ;;  %v2046_v16 = vsel %vm353_vm7, %v506_v19, %v500_v56 }
 0x30b   :  { %v922_v30 = vsel %vm289_vm0, %v2038_v37, 0.0  ;;  %v508_v41 = vsel %vm355_vm8, %v2046_v16, -inf  ;;  %v906_v47 = vsel %vm289_vm0, %v2049_v40, 0.0  ;;  %v910_v26 = vsel %vm289_vm0, %v2056_v42, 0.0 }
 0x30c   :  { %v2066_v53 = vmul.f32 %v1911_v34, %v285_v20  ;;  %v918_v44 = vsel %vm289_vm0, %v2061_v52, 0.0  ;;  %v650_v20 = vsel %vm343_vm2, %v649_v10, %v1956_v14 }
 0x30e   :  { %v926_v27 = vsel %vm289_vm0, %v2066_v53, 0.0 }
 0x36d   :  { %v2015_v12 = vpop.xlane.xlu0 %783 }
 0x371   :  { %v358_v17 = vpop.xlane.xlu0 %357 }
 0x372   :  { %v359_v63 = vsub.f32 %v1991_v62, %v358_v17  ;;  %v651_v62 = vsel %vm345_vm3, %v650_v20, %v1977_v49  ;;  %v797_v17 = vsel %vm341_vm1, %v1979_v51, %v2001_v4 }
 0x373   :  { %v652_v48 = vsel %vm347_vm4, %v651_v62, %v2005_v7 }
 0x374   :  { %v360_v11 = vmul.f32 1.442695, %v359_v63  ;;  %v653_v14 = vsel %vm349_vm5, %v652_v48, %v2007_v8  ;;  %v2708_v48 = vmov 4  }
 0x375   :  { %v786_v23 = vpop.permute.xlu0 %785  ;;  %v654_v51 = vsel %vm351_vm6, %v653_v14, %v1973_v46  ;;  %v2702_v14 = vmov 7  }
 0x376   :  { %v788_v3 = vsel %vm289_vm0, %v786_v23, 0.0  ;;  %1642 = vpow2.f32 %v360_v11  ;;  %v655_v7 = vsel %vm353_vm7, %v654_v51, %v2009_v9 }
 0x377   :  { %789 = vadd.xlane.f32.xlu1 %v788_v3  ;;  %v798_v3 = vsel %vm343_vm2, %v797_v17, %v2003_v6  ;;  %v656_v33 = vsel %vm355_vm8, %v655_v7, -inf  ;;  %v2698_v17 = vmov 2  }
 0x378   :  { %v799_v4 = vsel %vm345_vm3, %v798_v3, %v1960_v18 }
 0x379   :  { %v792_v29 = vpop.permute.xlu0 %791  ;;  %v800_v8 = vsel %vm347_vm4, %v799_v4, %v2012_v43 }
 0x37a   :  { %v794_v35 = vsel %vm289_vm0, %v792_v29, 0.0  ;;  %v801_v29 = vsel %vm349_vm5, %v800_v8, %v2015_v12 }
 0x37b   :  { %903 = vadd.xlane.f32.xlu1 %v902_v15  ;;  %795 = vadd.xlane.f32.xlu0 %v794_v35 }
 0x37f   :  { %915 = vadd.xlane.f32.xlu1 %v914_v38  ;;  %899 = vadd.xlane.f32.xlu0 %v898_v39 }
 0x383   :  { %923 = vadd.xlane.f32.xlu1 %v922_v30  ;;  %509 = vmax.xlane.f32.xlu0 %v508_v41  ;;  %v1643_v18 = vpop.eup %1642 }
 0x384   :  { %v362_v35 = vsel %vm355_vm8, %v1643_v18, 0.0 }
 0x387   :  { %907 = vadd.xlane.f32.xlu0 %v906_v47 }
 0x38b   :  { %911 = vadd.xlane.f32.xlu0 %v910_v26 }
 0x38f   :  { %919 = vadd.xlane.f32.xlu0 %v918_v44 }
 0x393   :  { %927 = vadd.xlane.f32.xlu0 %v926_v27 }
 0x3a9   :  { %1030 = vrot.lane.b32.xlu0 %v2056_v42, %s1790_s2 }
 0x3ad   :  { %1037 = vrot.lane.b32.xlu0 %v2033_v24, %s1790_s2 }
 0x400   :  { %v790_v55 = vpop.xlane.xlu1 %789 }
 0x401   :  { %v802_v6 = vsel %vm351_vm6, %v801_v29, %v790_v55 }
 0x404   :  { %v796_v31 = vpop.xlane.xlu0 %795  ;;  %v904_v34 = vpop.xlane.xlu1 %903 }
 0x405   :  { %v803_v46 = vsel %vm353_vm7, %v802_v6, %v796_v31  ;;  %v1791_v31 = vmov 1  }
 0x406   :  { %v804_v15 = vsel %vm355_vm8, %v803_v46, -inf  ;;  %1584 = vset.pattern.permute.xlu1 %v1791_v31 }
 0x408   :  { %v900_v54 = vpop.xlane.xlu0 %899  ;;  %v916_v45 = vpop.xlane.xlu1 %915 }
 0x409   :  { %v929_v58 = vsel %vm341_vm1, %v900_v54, %v904_v34  ;;  %v2700_v54 = vmov 0  }
 0x40a   :  { %1583 = vset.pattern.permute.xlu0 %v2700_v54 }
 0x40c   :  { %v2076_v56 = vpop.xlane.xlu0 %509  ;;  %v924_v13 = vpop.xlane.xlu1 %923 }
 0x410   :  { %v908_v57 = vpop.xlane.xlu0 %907 }
 0x411   :  { %v930_v59 = vsel %vm343_vm2, %v929_v58, %v908_v57 }
 0x414   :  { %v912_v60 = vpop.xlane.xlu0 %911 }
 0x415   :  { %v931_v61 = vsel %vm345_vm3, %v930_v59, %v912_v60 }
 0x416   :  { %v932_v50 = vsel %vm347_vm4, %v931_v61, %v916_v45  ;;  %v511_v61 = vsub.f32 %v2046_v16, %v2076_v56 }
 0x418   :  { %v920_v0 = vpop.xlane.xlu0 %919  ;;  %v512_v63 = vmul.f32 1.442695, %v511_v61 }
 0x419   :  { %v933_v21 = vsel %vm349_vm5, %v932_v50, %v920_v0 }
 0x41a   :  { %v934_v23 = vsel %vm351_vm6, %v933_v21, %v924_v13 }
 0x41c   :  { %v928_v22 = vpop.xlane.xlu0 %927 }
 0x41d   :  { %v935_v28 = vsel %vm353_vm7, %v934_v23, %v928_v22 }
 0x41e   :  { %v936_v2 = vsel %vm355_vm8, %v935_v28, -inf }
 0x41f   :  { %937 = vmax.xlane.f32.xlu1 %v936_v2  ;;  %v2704_v2 = vmov 6  }
 0x420   :  { %v1031_v49 = vpop.permute.xlu0 %1030 }
 0x421   :  { %v1033_v5 = vsel %vm289_vm0, %v1031_v49, 0.0 }
 0x423   :  { %1034 = vadd.xlane.f32.xlu1 %v1033_v5  ;;  %v2706_v5 = vmov 5  }
 0x424   :  { %v1038_v47 = vpop.permute.xlu0 %1037 }
 0x425   :  { %v1040_v26 = vsel %vm289_vm0, %v1038_v47, 0.0 }
 0x427   :  { %657 = vmax.xlane.f32.xlu1 %v656_v33 }
 0x42b   :  { %805 = vmax.xlane.f32.xlu1 %v804_v15 }
 0x42f   :  { %363 = vadd.xlane.f32.xlu1 %v362_v35 }
 0x440   :  { %1044 = vrot.lane.b32.xlu1 %v2020_v25, %s1790_s2 }
 0x4a8   :  { %v938_v9 = vpop.xlane.xlu1 %937 }
 0x4a9   :  { %v939_v43 = vsub.f32 %v935_v28, %v938_v9  ;;  %v2710_v28 = vmov 3  }
 0x4ab   :  { %v940_v12 = vmul.f32 1.442695, %v939_v43 }
 0x4ac   :  { %v2121_v36 = vpop.xlane.xlu1 %1034 }
 0x4ad   :  { %1644 = vpow2.f32 %v940_v12 }
 0x4ae   :  { %1646 = vpow2.f32 %v512_v63 }
 0x4b0   :  { %v658_v19 = vpop.xlane.xlu1 %657 }
 0x4b1   :  { %v659_v50 = vsub.f32 %v655_v7, %v658_v19 }
 0x4b3   :  { %v660_v0 = vmul.f32 1.442695, %v659_v50 }
 0x4b4   :  { %v806_v38 = vpop.xlane.xlu1 %805 }
 0x4b5   :  { %v807_v10 = vsub.f32 %v803_v46, %v806_v38  ;;  %1648 = vpow2.f32 %v660_v0 }
 0x4b7   :  { %v808_v21 = vmul.f32 1.442695, %v807_v10 }
 0x4b8   :  { %v364_v30 = vpop.xlane.xlu1 %363 }
 0x4b9   :  { %1650 = vpow2.f32 %v808_v21 }
 0x4ba   :  { %v2123_v39 = vpop.eup %1644  ;;  %1652 = vrcp.f32 %v364_v30 }
 0x4bb   :  { %v942_v41 = vsel %vm355_vm8, %v2123_v39, 0.0  ;;  %v2145_v11 = vpop.eup %1646 }
 0x4bc   :  { %943 = vadd.xlane.f32.xlu0 %v942_v41  ;;  %v1045_v44 = vpop.permute.xlu1 %1044  ;;  %v514_v13 = vsel %vm355_vm8, %v2145_v11, 0.0 }
 0x4bd   :  { %v1047_v27 = vsel %vm289_vm0, %v1045_v44, 0.0 }
 0x4c0   :  { %1041 = vadd.xlane.f32.xlu0 %v1040_v26 }
 0x4c2   :  { %v2149_v20 = vpop.eup %1648 }
 0x4c3   :  { %v662_v22 = vsel %vm355_vm8, %v2149_v20, 0.0 }
 0x4c4   :  { %1048 = vadd.xlane.f32.xlu0 %v1047_v27 }
 0x4c6   :  { %v2153_v16 = vpop.eup %1650 }
 0x4c7   :  { %v810_v56 = vsel %vm355_vm8, %v2153_v16, 0.0  ;;  %v1653_v23 = vpop.eup %1652 }
 0x4c8   :  { %v2157_v62 = vmul.f32 %v1653_v23, %v1643_v18 }
 0x4ca   :  { %2716 = vst [vmem:[#allocation15_spill] sm:$0xff] %v2157_v62 }
 0x4da   :  { %1051 = vrot.lane.b32.xlu0 %v2049_v40, %s1790_s2 }
 0x4de   :  { %1058 = vrot.lane.b32.xlu0 %v2066_v53, %s1790_s2 }
 0x545   :  { %v944_v55 = vpop.xlane.xlu0 %943 }
 0x546   :  { %1654 = vrcp.f32 %v944_v55 }
 0x549   :  { %v2135_v34 = vpop.xlane.xlu0 %1041 }
 0x54d   :  { %v2137_v57 = vpop.xlane.xlu0 %1048 }
 0x551   :  { %v1052_v58 = vpop.permute.xlu0 %1051 }
 0x552   :  { %v1054_v59 = vsel %vm289_vm0, %v1052_v58, 0.0 }
 0x553   :  { %1055 = vadd.xlane.f32.xlu1 %v1054_v59  ;;  %v1655_v3 = vpop.eup %1654 }
 0x554   :  { %v2171_v49 = vmul.f32 %v1655_v3, %v2123_v39 }
 0x555   :  { %v1059_v60 = vpop.permute.xlu0 %1058 }
 0x556   :  { %v1061_v45 = vsel %vm289_vm0, %v1059_v60, 0.0  ;;  %2717 = vst [vmem:[#allocation16_spill] sm:$0xff] %v2171_v49 }
 0x557   :  { %1062 = vadd.xlane.f32.xlu0 %v1061_v45 }
 0x564   :  { %1065 = vrot.lane.b32.xlu1 %v2026_v32, %s1790_s2 }
 0x588   :  { %515 = vadd.xlane.f32.xlu1 %v514_v13 }
 0x58c   :  { %663 = vadd.xlane.f32.xlu1 %v662_v22 }
 0x590   :  { %811 = vadd.xlane.f32.xlu1 %v810_v56 }
 0x5a1   :  { %375 = vperm.xlu1 %1584, %v2157_v62  }
 0x5a5   :  { %1585 = vset.pattern.permute.xlu1 %v2698_v17 }
 0x5a6   :  { %385 = vperm.xlu1 %1585, %v2157_v62  }
 0x5aa   :  { %1586 = vset.pattern.permute.xlu1 %v2710_v28 }
 0x5ab   :  { %395 = vperm.xlu1 %1586, %v2157_v62  }
 0x5af   :  { %1587 = vset.pattern.permute.xlu1 %v2708_v48 }
 0x5b0   :  { %405 = vperm.xlu1 %1587, %v2157_v62  }
 0x5b4   :  { %1589 = vset.pattern.permute.xlu1 %v2704_v2 }
 0x5b5   :  { %425 = vperm.xlu1 %1589, %v2157_v62  }
 0x5b9   :  { %1590 = vset.pattern.permute.xlu1 %v2702_v14 }
 0x5ba   :  { %435 = vperm.xlu1 %1590, %v2157_v62  }
 0x5be   :  { %1591 = vset.pattern.permute.xlu1 %v2700_v54 }
 0x5bf   :  { %950 = vperm.xlu1 %1591, %v2171_v49  }
 0x5c3   :  { %1593 = vset.pattern.permute.xlu1 %v2698_v17 }
 0x5c4   :  { %965 = vperm.xlu1 %1593, %v2171_v49  }
 0x5c8   :  { %1594 = vset.pattern.permute.xlu1 %v2710_v28 }
 0x5c9   :  { %975 = vperm.xlu1 %1594, %v2171_v49  }
 0x5cd   :  { %1595 = vset.pattern.permute.xlu1 %v2708_v48 }
 0x5ce   :  { %985 = vperm.xlu1 %1595, %v2171_v49  }
 0x5d2   :  { %1596 = vset.pattern.permute.xlu1 %v2706_v5 }
 0x5d3   :  { %995 = vperm.xlu1 %1596, %v2171_v49  }
 0x5d7   :  { %1597 = vset.pattern.permute.xlu1 %v2704_v2 }
 0x5d8   :  { %1005 = vperm.xlu1 %1597, %v2171_v49  }
 0x5dc   :  { %1598 = vset.pattern.permute.xlu1 %v2702_v14  ;;  %v2186_v51 = vpop.xlane.xlu1 %1055 }
 0x5dd   :  { %1015 = vperm.xlu1 %1598, %v2171_v49  }
 0x5e0   :  { %v1066_v4 = vpop.permute.xlu1 %1065  ;;  %v2276_v10 = vpop.xlane.xlu0 %1062 }
 0x5e1   :  { %v1068_v7 = vsel %vm289_vm0, %v1066_v4, 0.0  ;;  %1599 = vset.pattern.permute.xlu1 %v2700_v54 }
 0x5e2   :  { %1069 = vadd.xlane.f32.xlu0 %v1068_v7 }
 0x5f8   :  { %370 = vperm.xlu0 %1583, %v2157_v62  }
 0x5fc   :  { %1588 = vset.pattern.permute.xlu0 %v2706_v5 }
 0x5fd   :  { %415 = vperm.xlu0 %1588, %v2157_v62  }
 0x601   :  { %1592 = vset.pattern.permute.xlu0 %v1791_v31 }
 0x602   :  { %955 = vperm.xlu0 %1592, %v2171_v49  }
 0x606   :  { %1072 = vrot.lane.b32.xlu0 %v2061_v52, %s1790_s2 }
 0x611   :  { %v516_v8 = vpop.xlane.xlu1 %515 }
 0x612   :  { %1656 = vrcp.f32 %v516_v8 }
 0x615   :  { %v664_v29 = vpop.xlane.xlu1 %663 }
 0x616   :  { %1658 = vrcp.f32 %v664_v29 }
 0x619   :  { %v812_v6 = vpop.xlane.xlu1 %811 }
 0x61a   :  { %1660 = vrcp.f32 %v812_v6 }
 0x61d   :  { %v2198_v33 = vpop.permute.xlu1 %375 }
 0x61e   :  { %v378_v13 = vmul.f32 %v2198_v33, %v1844_v1 }
 0x61f   :  { %v1657_v46 = vpop.eup %1656 }
 0x620   :  { %v2201_v15 = vmul.f32 %v1657_v46, %v2145_v11 }
 0x621   :  { %v2203_v18 = vpop.permute.xlu1 %385 }
 0x622   :  { %522 = vperm.xlu1 %1599, %v2201_v15  }
 0x623   :  { %v1659_v35 = vpop.eup %1658 }
 0x624   :  { %v2207_v9 = vmul.f32 %v1659_v35, %v2149_v20  ;;  %v388_v20 = vmul.f32 %v2203_v18, %v1844_v1 }
 0x626   :  { %2718 = vst [vmem:[#allocation17_spill] sm:$0xff] %v2207_v9  ;;  %1600 = vset.pattern.permute.xlu1 %v1791_v31  ;;  %v2210_v43 = vpop.permute.xlu1 %395  ;;  %675 = vperm.xlu0 %1592, %v2207_v9  }
 0x627   :  { %v1661_v12 = vpop.eup %1660  ;;  %527 = vperm.xlu1 %1600, %v2201_v15  }
 0x628   :  { %v2215_v19 = vmul.f32 %v1661_v12, %v2153_v16  ;;  %v398_v16 = vmul.f32 %v2210_v43, %v1844_v1 }
 0x62a   :  { %2719 = vst [vmem:[#allocation18_spill] sm:$0xff] %v2215_v19  ;;  %823 = vperm.xlu0 %1592, %v2215_v19  }
 0x62b   :  { %1601 = vset.pattern.permute.xlu1 %v2698_v17  ;;  %v2219_v38 = vpop.permute.xlu1 %405 }
 0x62c   :  { %537 = vperm.xlu1 %1601, %v2201_v15   ;;  %v408_v23 = vmul.f32 %v2219_v38, %v1844_v1 }
 0x630   :  { %1602 = vset.pattern.permute.xlu1 %v2710_v28  ;;  %v426_v39 = vpop.permute.xlu1 %425 }
 0x631   :  { %v428_v30 = vmul.f32 %v426_v39, %v1844_v1  ;;  %547 = vperm.xlu1 %1602, %v2201_v15  }
 0x633   :  { %430 = vrot.lane.b32.xlu0 %v428_v30, %s1785_s19 }
 0x635   :  { %1603 = vset.pattern.permute.xlu1 %v2708_v48  ;;  %v436_v41 = vpop.permute.xlu1 %435 }
 0x636   :  { %v438_v47 = vmul.f32 %v436_v41, %v1844_v1  ;;  %557 = vperm.xlu1 %1603, %v2201_v15  }
 0x638   :  { %440 = vrot.lane.b32.xlu0 %v438_v47, %s1799_s5 }
 0x63a   :  { %1604 = vset.pattern.permute.xlu1 %v2706_v5  ;;  %v2231_v26 = vpop.permute.xlu1 %950 }
 0x63b   :  { %567 = vperm.xlu1 %1604, %v2201_v15  }
 0x63c   :  { %1079 = vrot.lane.b32.xlu0 %v2038_v37, %s1790_s2 }
 0x63f   :  { %1605 = vset.pattern.permute.xlu1 %v2704_v2  ;;  %v966_v44 = vpop.permute.xlu1 %965 }
 0x640   :  { %v968_v27 = vmul.f32 %v966_v44, %v1844_v1  ;;  %577 = vperm.xlu1 %1605, %v2201_v15  }
 0x642   :  { %970 = vrot.lane.b32.xlu0 %v968_v27, %s1790_s2 }
 0x644   :  { %1606 = vset.pattern.permute.xlu1 %v2702_v14  ;;  %v976_v31 = vpop.permute.xlu1 %975 }
 0x645   :  { %v978_v55 = vmul.f32 %v976_v31, %v1844_v1  ;;  %587 = vperm.xlu1 %1606, %v2201_v15  }
 0x647   :  { %980 = vrot.lane.b32.xlu0 %v978_v55, %s1800_s6 }
 0x649   :  { %1607 = vset.pattern.permute.xlu1 %v2700_v54  ;;  %v986_v58 = vpop.permute.xlu1 %985 }
 0x64a   :  { %v988_v59 = vmul.f32 %v986_v58, %v1844_v1  ;;  %670 = vperm.xlu1 %1607, %v2207_v9  }
 0x64c   :  { %990 = vrot.lane.b32.xlu0 %v988_v59, %s1789_s0 }
 0x64e   :  { %1608 = vset.pattern.permute.xlu1 %v2698_v17  ;;  %v996_v60 = vpop.permute.xlu1 %995 }
 0x64f   :  { %v998_v45 = vmul.f32 %v996_v60, %v1844_v1  ;;  %685 = vperm.xlu1 %1608, %v2207_v9  }
 0x651   :  { %1000 = vrot.lane.b32.xlu0 %v998_v45, %s1801_s7 }
 0x653   :  { %1609 = vset.pattern.permute.xlu1 %v2710_v28  ;;  %v1006_v61 = vpop.permute.xlu1 %1005 }
 0x654   :  { %v1008_v63 = vmul.f32 %v1006_v61, %v1844_v1  ;;  %695 = vperm.xlu1 %1609, %v2207_v9  }
 0x656   :  { %1010 = vrot.lane.b32.xlu0 %v1008_v63, %s1785_s19 }
 0x658   :  { %1610 = vset.pattern.permute.xlu1 %v2708_v48  ;;  %v1016_v50 = vpop.permute.xlu1 %1015 }
 0x659   :  { %v1018_v0 = vmul.f32 %v1016_v50, %v1844_v1  ;;  %705 = vperm.xlu1 %1610, %v2207_v9  }
 0x65b   :  { %1020 = vrot.lane.b32.xlu0 %v1018_v0, %s1799_s5 }
 0x65d   :  { %1611 = vset.pattern.permute.xlu1 %v2706_v5 }
 0x65e   :  { %715 = vperm.xlu1 %1611, %v2207_v9  }
 0x662   :  { %1612 = vset.pattern.permute.xlu1 %v2704_v2 }
 0x663   :  { %725 = vperm.xlu1 %1612, %v2207_v9  }
 0x667   :  { %1613 = vset.pattern.permute.xlu1 %v2702_v14 }
 0x668   :  { %735 = vperm.xlu1 %1613, %v2207_v9  }
 0x66b   :  { %v2280_v21 = vpop.xlane.xlu0 %1069 }
 0x66c   :  { %1614 = vset.pattern.permute.xlu1 %v2700_v54 }
 0x66d   :  { %818 = vperm.xlu1 %1614, %v2215_v19  }
 0x671   :  { %1615 = vset.pattern.permute.xlu1 %v2698_v17 }
 0x672   :  { %833 = vperm.xlu1 %1615, %v2215_v19  }
 0x673   :  { %v2283_v11 = vpop.permute.xlu0 %370 }
 0x676   :  { %1616 = vset.pattern.permute.xlu1 %v2710_v28 }
 0x677   :  { %843 = vperm.xlu1 %1616, %v2215_v19  }
 0x678   :  { %v416_v22 = vpop.permute.xlu0 %415 }
 0x679   :  { %v418_v3 = vmul.f32 %v416_v22, %v1844_v1 }
 0x67b   :  { %1617 = vset.pattern.permute.xlu1 %v2708_v48 }
 0x67c   :  { %853 = vperm.xlu1 %1617, %v2215_v19  }
 0x67d   :  { %v956_v56 = vpop.permute.xlu0 %955 }
 0x67e   :  { %v958_v7 = vmul.f32 %v956_v56, %v1844_v1 }
 0x680   :  { %1618 = vset.pattern.permute.xlu1 %v2706_v5 }
 0x681   :  { %863 = vperm.xlu1 %1618, %v2215_v19   ;;  %v1073_v4 = vpop.permute.xlu0 %1072 }
 0x682   :  { %v1075_v39 = vsel %vm289_vm0, %v1073_v4, 0.0 }
 0x685   :  { %1619 = vset.pattern.permute.xlu1 %v2704_v2 }
 0x686   :  { %873 = vperm.xlu1 %1619, %v2215_v19  }
 0x68a   :  { %1620 = vset.pattern.permute.xlu1 %v2702_v14 }
 0x68b   :  { %883 = vperm.xlu1 %1620, %v2215_v19  }
 0x68f   :  { %380 = vrot.lane.b32.xlu1 %v378_v13, %s1802_s8 }
 0x690   :  { %1621 = vset.pattern.permute.xlu1 %v2698_v17  ;;  %v1085_v17 = vsel %vm341_vm1, %v2121_v36, %v2135_v34 }
 0x691   :  { %v1086_v14 = vsel %vm343_vm2, %v1085_v17, %v2137_v57 }
 0x692   :  { %v1087_v5 = vsel %vm345_vm3, %v1086_v14, %v2186_v51 }
 0x693   :  { %390 = vrot.lane.b32.xlu1 %v388_v20, %s1790_s2  ;;  %v1088_v48 = vsel %vm347_vm4, %v1087_v5, %v2276_v10 }
 0x694   :  { %v1089_v28 = vsel %vm349_vm5, %v1088_v48, %v2280_v21 }
 0x697   :  { %400 = vrot.lane.b32.xlu1 %v398_v16, %s1800_s6 }
 0x69b   :  { %410 = vrot.lane.b32.xlu1 %v408_v23, %s1789_s0 }
 0x69d   :  { %v2309_v33 = vpop.permute.xlu1 %522 }
 0x69f   :  { %420 = vrot.lane.b32.xlu1 %v418_v3, %s1801_s7 }
 0x6a1   :  { %v2302_v8 = vpop.permute.xlu0 %675 }
 0x6a2   :  { %v2313_v18 = vpop.permute.xlu1 %527 }
 0x6a3   :  { %960 = vrot.lane.b32.xlu1 %v958_v7, %s1802_s8 }
 0x6a5   :  { %v2305_v29 = vpop.permute.xlu0 %823 }
 0x6a7   :  { %v538_v12 = vpop.permute.xlu1 %537 }
 0x6a9   :  { %v2307_v6 = vpop.permute.xlu0 %430 }
 0x6ac   :  { %v2316_v1 = vpop.permute.xlu1 %547 }
 0x6ad   :  { %v2311_v46 = vpop.permute.xlu0 %440 }
 0x6b1   :  { %v1080_v35 = vpop.permute.xlu0 %1079  ;;  %v2318_v38 = vpop.permute.xlu1 %557 }
 0x6b2   :  { %v1082_v43 = vsel %vm289_vm0, %v1080_v35, 0.0 }
 0x6b3   :  { %1083 = vadd.xlane.f32.xlu0 %v1082_v43 }
 0x6b5   :  { %v2353_v16 = vpop.permute.xlu0 %970 }
 0x6b6   :  { %v568_v30 = vpop.permute.xlu1 %567 }
 0x6b9   :  { %v2357_v23 = vpop.permute.xlu0 %980 }
 0x6bb   :  { %v578_v41 = vpop.permute.xlu1 %577 }
 0x6be   :  { %v2361_v4 = vpop.permute.xlu0 %990 }
 0x6c0   :  { %v2321_v47 = vpop.permute.xlu1 %587 }
 0x6c3   :  { %v2365_v35 = vpop.permute.xlu0 %1000 }
 0x6c5   :  { %v2323_v44 = vpop.permute.xlu1 %670 }
 0x6c7   :  { %1076 = vadd.xlane.f32.xlu1 %v1075_v39 }
 0x6c8   :  { %v2369_v39 = vpop.permute.xlu0 %1010 }
 0x6ca   :  { %v2325_v27 = vpop.permute.xlu1 %685 }
 0x6cd   :  { %v2378_v2 = vpop.permute.xlu0 %1020 }
 0x6cf   :  { %v2327_v31 = vpop.permute.xlu1 %695 }
 0x6d4   :  { %v2329_v55 = vpop.permute.xlu1 %705 }
 0x6d9   :  { %v2331_v58 = vpop.permute.xlu1 %715 }
 0x6de   :  { %v2333_v59 = vpop.permute.xlu1 %725 }
 0x6e3   :  { %v2335_v60 = vpop.permute.xlu1 %735 }
 0x6e8   :  { %v2337_v45 = vpop.permute.xlu1 %818 }
 0x6ed   :  { %v2339_v61 = vpop.permute.xlu1 %833 }
 0x6f2   :  { %v2341_v63 = vpop.permute.xlu1 %843 }
 0x6f7   :  { %v2343_v50 = vpop.permute.xlu1 %853 }
 0x6fc   :  { %v2345_v0 = vpop.permute.xlu1 %863 }
 0x701   :  { %v2347_v13 = vpop.permute.xlu1 %873 }
 0x706   :  { %v2349_v20 = vpop.permute.xlu1 %883 }
 0x70a   :  { %v2351_v22 = vpop.permute.xlu1 %380 }
 0x70e   :  { %v2355_v56 = vpop.permute.xlu1 %390 }
 0x712   :  { %v2359_v3 = vpop.permute.xlu1 %400 }
 0x716   :  { %v2363_v7 = vpop.permute.xlu1 %410 }
 0x71a   :  { %v2367_v43 = vpop.permute.xlu1 %420 }
 0x71e   :  { %v2374_v54 = vpop.permute.xlu1 %960 }
 0x73c   :  { %v1084_v49 = vpop.xlane.xlu0 %1083 }
 0x750   :  { %v1077_v62 = vpop.xlane.xlu1 %1076 }
 0x751   :  { %v1090_v36 = vsel %vm351_vm6, %v1089_v28, %v1077_v62  ;;  %v2394_v62 = vld [vmem:[#allocation2] sm:$0xff] }
 0x752   :  { %v1091_v34 = vsel %vm353_vm7, %v1090_v36, %v1084_v49  ;;  %v540_v28 = vmul.f32 %v2394_v62, %v538_v12  ;;  %v2720_v49 = vmov 3   ;;  %v580_v21 = vmul.f32 %v2394_v62, %v578_v41 }
 0x753   :  { %v1092_v9 = vsel %vm355_vm8, %v1091_v34, -inf  ;;  %v2721_v36 = vmov 4   ;;  %v550_v12 = vmul.f32 %v2394_v62, %v2316_v1  ;;  %v728_v41 = vmul.f32 %v2394_v62, %v2333_v59 }
 0x754   :  { %1093 = vmax.xlane.f32.xlu1 %v1092_v9  ;;  %v570_v9 = vmul.f32 %v2394_v62, %v568_v30  ;;  %v590_v30 = vmul.f32 %v2394_v62, %v2321_v47  ;;  %v678_v1 = vmul.f32 %v2394_v62, %v2302_v8  ;;  %v738_v47 = vmul.f32 %v2394_v62, %v2335_v60 }
 0x755   :  { %v846_v59 = vmul.f32 %v2394_v62, %v2341_v63  ;;  %v698_v8 = vmul.f32 %v2394_v62, %v2327_v31  ;;  %v856_v60 = vmul.f32 %v2394_v62, %v2343_v50  ;;  %v866_v63 = vmul.f32 %v2394_v62, %v2345_v0 }
 0x756   :  { %v718_v31 = vmul.f32 %v2394_v62, %v2331_v58  ;;  %v876_v50 = vmul.f32 %v2394_v62, %v2347_v13  ;;  %v886_v0 = vmul.f32 %v2394_v62, %v2349_v20  ;;  %v836_v58 = vmul.f32 %v2394_v62, %v2339_v61 }
 0x7dd   :  { %v1094_v57 = vpop.xlane.xlu1 %1093 }
 0x7de   :  { %v1095_v17 = vsub.f32 %v1091_v34, %v1094_v57 }
 0x7e0   :  { %v1096_v19 = vmul.f32 1.442695, %v1095_v17 }
 0x7e2   :  { %1662 = vpow2.f32 %v1096_v19  ;;  %v530_v19 = vmul.f32 %v2394_v62, %v2313_v18  ;;  %v560_v18 = vmul.f32 %v2394_v62, %v2318_v38  ;;  %v688_v38 = vmul.f32 %v2394_v62, %v2325_v27 }
 0x7e3   :  { %v708_v27 = vmul.f32 %v2394_v62, %v2329_v55  ;;  %v826_v55 = vmul.f32 %v2394_v62, %v2305_v29  ;;  %v953_v29 = vmul.f32 %v2394_v62, %v2231_v26 }
 0x7e5   :  { %v963_v17 = vadd.f32 %v2374_v54, %v953_v29 }
 0x7ef   :  { %v1663_v14 = vpop.eup %1662 }
 0x7f0   :  { %v1098_v51 = vsel %vm355_vm8, %v1663_v14, 0.0 }
 0x7f1   :  { %1099 = vadd.xlane.f32.xlu1 %v1098_v51 }
 0x87a   :  { %v1100_v5 = vpop.xlane.xlu1 %1099 }
 0x87b   :  { %1664 = vrcp.f32 %v1100_v5  ;;  %v525_v5 = vmul.f32 %v2394_v62, %v2309_v33 }
 0x888   :  { %v1665_v48 = vpop.eup %1664 }
 0x889   :  { %v2390_v10 = vmul.f32 %v1665_v48, %v1663_v14  ;;  %v973_v48 = vadd.f32 %v2353_v16, %v963_v17 }
 0x88b   :  { %1121 = vperm.xlu1 %1621, %v2390_v10   ;;  %1111 = vperm.xlu0 %1592, %v2390_v10   ;;  %v983_v54 = vadd.f32 %v2357_v23, %v973_v48 }
 0x88f   :  { %1622 = vset.pattern.permute.xlu1 %v2720_v49  ;;  %542 = vrot.lane.b32.xlu0 %v540_v28, %s1790_s2 }
 0x890   :  { %1131 = vperm.xlu1 %1622, %v2390_v10  }
 0x893   :  { %572 = vrot.lane.b32.xlu0 %v570_v9, %s1801_s7 }
 0x894   :  { %532 = vrot.lane.b32.xlu1 %v530_v19, %s1802_s8 }
 0x895   :  { %1623 = vset.pattern.permute.xlu1 %v2721_v36 }
 0x897   :  { %582 = vrot.lane.b32.xlu0 %v580_v21, %s1785_s19 }
 0x898   :  { %552 = vrot.lane.b32.xlu1 %v550_v12, %s1800_s6 }
 0x89b   :  { %592 = vrot.lane.b32.xlu0 %v590_v30, %s1799_s5  ;;  %v2722_v30 = vmov 5  }
 0x89c   :  { %562 = vrot.lane.b32.xlu1 %v560_v18, %s1789_s0  ;;  %v993_v18 = vadd.f32 %v2361_v4, %v983_v54 }
 0x89f   :  { %730 = vrot.lane.b32.xlu0 %v728_v41, %s1785_s19 }
 0x8a0   :  { %680 = vrot.lane.b32.xlu1 %v678_v1, %s1802_s8 }
 0x8a3   :  { %740 = vrot.lane.b32.xlu0 %v738_v47, %s1799_s5  ;;  %v1003_v47 = vadd.f32 %v2365_v35, %v993_v18  ;;  %v673_v35 = vmul.f32 %v2394_v62, %v2323_v44 }
 0x8a4   :  { %690 = vrot.lane.b32.xlu1 %v688_v38, %s1790_s2 }
 0x8a7   :  { %848 = vrot.lane.b32.xlu0 %v846_v59, %s1800_s6  ;;  %v2723_v59 = vmov 6  }
 0x8a8   :  { %700 = vrot.lane.b32.xlu1 %v698_v8, %s1800_s6 }
 0x8ab   :  { %858 = vrot.lane.b32.xlu0 %v856_v60, %s1789_s0 }
 0x8ac   :  { %710 = vrot.lane.b32.xlu1 %v708_v27, %s1789_s0  ;;  %v1013_v27 = vadd.f32 %v2369_v39, %v1003_v47 }
 0x8af   :  { %868 = vrot.lane.b32.xlu0 %v866_v63, %s1801_s7 }
 0x8b0   :  { %720 = vrot.lane.b32.xlu1 %v718_v31, %s1801_s7  ;;  %v2724_v31 = vmov 7  }
 0x8b3   :  { %878 = vrot.lane.b32.xlu0 %v876_v50, %s1785_s19  ;;  %v1023_v50 = vadd.f32 %v2378_v2, %v1013_v27  ;;  %v821_v2 = vmul.f32 %v2394_v62, %v2337_v45 }
 0x8b4   :  { %828 = vrot.lane.b32.xlu1 %v826_v55, %s1802_s8 }
 0x8b7   :  { %888 = vrot.lane.b32.xlu0 %v886_v0, %s1799_s5 }
 0x8b8   :  { %838 = vrot.lane.b32.xlu1 %v836_v58, %s1790_s2 }
 0x906   :  { %v1122_v34 = vpop.permute.xlu1 %1121  ;;  %v1112_v57 = vpop.permute.xlu0 %1111 }
 0x907   :  { %v1114_v13 = vmul.f32 %v2394_v62, %v1112_v57  ;;  %v1124_v20 = vmul.f32 %v2394_v62, %v1122_v34  ;;  %v2725_v34 = vmov 0  }
 0x909   :  { %1116 = vrot.lane.b32.xlu1 %v1114_v13, %s1802_s8 }
 0x90a   :  { %v543_v14 = vpop.permute.xlu0 %542 }
 0x90b   :  { %v1132_v51 = vpop.permute.xlu1 %1131 }
 0x90c   :  { %v1134_v61 = vmul.f32 %v2394_v62, %v1132_v51 }
 0x90d   :  { %1126 = vrot.lane.b32.xlu1 %v1124_v20, %s1790_s2 }
 0x90e   :  { %1136 = vrot.lane.b32.xlu0 %v1134_v61, %s1800_s6  ;;  %v573_v26 = vpop.permute.xlu0 %572 }
 0x90f   :  { %v533_v28 = vpop.permute.xlu1 %532 }
 0x910   :  { %v535_v9 = vadd.f32 %v533_v28, %v525_v5 }
 0x911   :  { %1141 = vperm.xlu1 %1623, %v2390_v10  }
 0x912   :  { %v583_v19 = vpop.permute.xlu0 %582  ;;  %v545_v21 = vadd.f32 %v543_v14, %v535_v9 }
 0x913   :  { %v553_v12 = vpop.permute.xlu1 %552 }
 0x914   :  { %v555_v41 = vadd.f32 %v553_v12, %v545_v21 }
 0x915   :  { %1624 = vset.pattern.permute.xlu1 %v2722_v30 }
 0x916   :  { %1151 = vperm.xlu1 %1624, %v2390_v10   ;;  %v593_v33 = vpop.permute.xlu0 %592 }
 0x917   :  { %v563_v16 = vpop.permute.xlu1 %562 }
 0x918   :  { %v565_v1 = vadd.f32 %v563_v16, %v555_v41 }
 0x91a   :  { %v575_v38 = vadd.f32 %v573_v26, %v565_v1  ;;  %1625 = vset.pattern.permute.xlu1 %v2723_v59  ;;  %v731_v60 = vpop.permute.xlu0 %730 }
 0x91b   :  { %v681_v8 = vpop.permute.xlu1 %680  ;;  %1161 = vperm.xlu1 %1625, %v2390_v10  }
 0x91c   :  { %v585_v23 = vadd.f32 %v583_v19, %v575_v38  ;;  %v683_v58 = vadd.f32 %v681_v8, %v673_v35 }
 0x91e   :  { %v2480_v63 = vadd.f32 %v593_v33, %v585_v23  ;;  %v741_v55 = vpop.permute.xlu0 %740 }
 0x91f   :  { %v691_v4 = vpop.permute.xlu1 %690  ;;  %1626 = vset.pattern.permute.xlu1 %v2724_v31 }
 0x920   :  { %1171 = vperm.xlu1 %1626, %v2390_v10   ;;  %v693_v39 = vadd.f32 %v691_v4, %v683_v58 }
 0x922   :  { %v849_v29 = vpop.permute.xlu0 %848 }
 0x923   :  { %v701_v0 = vpop.permute.xlu1 %700 }
 0x924   :  { %1025 = vrot.lane.b32.xlu1 %v1023_v50, %s1789_s0  ;;  %v703_v13 = vadd.f32 %v701_v0, %v693_v39 }
 0x925   :  { %1627 = vset.pattern.permute.xlu1 %v2725_v34 }
 0x926   :  { %v859_v61 = vpop.permute.xlu0 %858 }
 0x927   :  { %v711_v57 = vpop.permute.xlu1 %710 }
 0x928   :  { %v713_v17 = vadd.f32 %v711_v57, %v703_v13 }
 0x92a   :  { %v869_v9 = vpop.permute.xlu0 %868 }
 0x92b   :  { %v721_v14 = vpop.permute.xlu1 %720 }
 0x92c   :  { %v723_v20 = vadd.f32 %v721_v14, %v713_v17 }
 0x92e   :  { %v733_v51 = vadd.f32 %v731_v60, %v723_v20  ;;  %v879_v12 = vpop.permute.xlu0 %878 }
 0x92f   :  { %v829_v5 = vpop.permute.xlu1 %828 }
 0x930   :  { %v743_v44 = vadd.f32 %v741_v55, %v733_v51  ;;  %v831_v48 = vadd.f32 %v829_v5, %v821_v2 }
 0x932   :  { %v889_v27 = vpop.permute.xlu0 %888 }
 0x933   :  { %v839_v26 = vpop.permute.xlu1 %838 }
 0x934   :  { %v841_v28 = vadd.f32 %v839_v26, %v831_v48 }
 0x936   :  { %v851_v54 = vadd.f32 %v849_v29, %v841_v28 }
 0x938   :  { %v861_v19 = vadd.f32 %v859_v61, %v851_v54  ;;  %v373_v54 = vmul.f32 %v2394_v62, %v2283_v11 }
 0x93a   :  { %v871_v21 = vadd.f32 %v869_v9, %v861_v19  ;;  %v383_v19 = vadd.f32 %v2351_v22, %v373_v54 }
 0x93c   :  { %v881_v18 = vadd.f32 %v879_v12, %v871_v21  ;;  %v393_v12 = vadd.f32 %v2355_v56, %v383_v19 }
 0x97b   :  { %v1117_v41 = vpop.permute.xlu1 %1116 }
 0x97f   :  { %v1127_v33 = vpop.permute.xlu1 %1126 }
 0x980   :  { %v1137_v4 = vpop.permute.xlu0 %1136 }
 0x98c   :  { %v1142_v16 = vpop.permute.xlu1 %1141 }
 0x98d   :  { %v1144_v1 = vmul.f32 %v2394_v62, %v1142_v16 }
 0x98f   :  { %1146 = vrot.lane.b32.xlu0 %v1144_v1, %s1789_s0 }
 0x991   :  { %v1152_v47 = vpop.permute.xlu1 %1151 }
 0x992   :  { %v1154_v45 = vmul.f32 %v2394_v62, %v1152_v47 }
 0x994   :  { %1156 = vrot.lane.b32.xlu0 %v1154_v45, %s1801_s7 }
 0x996   :  { %v1162_v38 = vpop.permute.xlu1 %1161 }
 0x997   :  { %v1164_v8 = vmul.f32 %v2394_v62, %v1162_v38 }
 0x999   :  { %1166 = vrot.lane.b32.xlu0 %v1164_v8, %s1785_s19 }
 0x99b   :  { %v1172_v23 = vpop.permute.xlu1 %1171 }
 0x99c   :  { %v1174_v60 = vmul.f32 %v2394_v62, %v1172_v23 }
 0x99e   :  { %1176 = vrot.lane.b32.xlu0 %v1174_v60, %s1799_s5 }
 0x9a2   :  { %1185 = vrot.lane.b32.xlu0 %v2049_v40, %s1789_s0 }
 0x9a6   :  { %1191 = vrot.lane.b32.xlu0 %v2056_v42, %s1789_s0 }
 0xa01   :  { %v1147_v35 = vpop.permute.xlu0 %1146 }
 0xa06   :  { %v1157_v50 = vpop.permute.xlu0 %1156 }
 0xa0b   :  { %v1167_v55 = vpop.permute.xlu0 %1166 }
 0xa10   :  { %v1177_v0 = vpop.permute.xlu0 %1176 }
 0xa14   :  { %v1186_v58 = vpop.permute.xlu0 %1185 }
 0xa15   :  { %v1188_v39 = vsel %vm289_vm0, %v1186_v58, 0.0 }
 0xa16   :  { %1189 = vadd.xlane.f32.xlu1 %v1188_v39 }
 0xa18   :  { %v1192_v57 = vpop.permute.xlu0 %1191 }
 0xa19   :  { %v1194_v13 = vsel %vm289_vm0, %v1192_v57, 0.0 }
 0xa1a   :  { %1195 = vadd.xlane.f32.xlu0 %v1194_v13 }
 0xa27   :  { %1106 = vperm.xlu1 %1627, %v2390_v10  }
 0xa2b   :  { %1197 = vrot.lane.b32.xlu1 %v2033_v24, %s1789_s0 }
 0xa2f   :  { %1339 = vrot.lane.b32.xlu1 %v2049_v40, %s1785_s19  ;;  %v891_v40 = vadd.f32 %v889_v27, %v881_v18  ;;  %v403_v18 = vadd.f32 %v2359_v3, %v393_v12 }
 0xa33   :  { %1203 = vrot.lane.b32.xlu1 %v2020_v25, %s1789_s0 }
 0xa37   :  { %1345 = vrot.lane.b32.xlu1 %v2056_v42, %s1785_s19  ;;  %v1026_v42 = vpop.permute.xlu1 %1025 }
 0xa38   :  { %v1028_v27 = vadd.f32 %v2394_v62, %v1026_v42 }
 0xa3b   :  { %1351 = vrot.lane.b32.xlu1 %v2033_v24, %s1785_s19 }
 0xa3f   :  { %1357 = vrot.lane.b32.xlu1 %v2061_v52, %s1785_s19 }
 0xa43   :  { %1363 = vrot.lane.b32.xlu1 %v2038_v37, %s1785_s19 }
 0xa47   :  { %1369 = vrot.lane.b32.xlu1 %v2066_v53, %s1785_s19 }
 0xa4b   :  { %597 = vrot.lane.b32.xlu1 %v2480_v63, %s1799_s5 }
 0xa4f   :  { %745 = vrot.lane.b32.xlu1 %v743_v44, %s1785_s19 }
 0xa53   :  { %893 = vrot.lane.b32.xlu1 %v891_v40, %s1801_s7 }
 0xa9f   :  { %v2526_v29 = vpop.xlane.xlu1 %1189 }
 0xaa3   :  { %v1107_v24 = vpop.permute.xlu1 %1106 }
 0xaa4   :  { %v1109_v17 = vmul.f32 %v2394_v62, %v1107_v24 }
 0xaa6   :  { %v1119_v14 = vadd.f32 %v1117_v41, %v1109_v17 }
 0xaa7   :  { %v1198_v20 = vpop.permute.xlu1 %1197 }
 0xaa8   :  { %v1129_v51 = vadd.f32 %v1127_v33, %v1119_v14  ;;  %v1200_v61 = vsel %vm289_vm0, %v1198_v20, 0.0  ;;  %v413_v33 = vadd.f32 %v2363_v7, %v403_v18 }
 0xaa9   :  { %1201 = vadd.xlane.f32.xlu0 %v1200_v61 }
 0xaaa   :  { %v1139_v5 = vadd.f32 %v1137_v4, %v1129_v51  ;;  %v423_v16 = vadd.f32 %v2367_v43, %v413_v33 }
 0xaab   :  { %v2530_v2 = vpop.permute.xlu1 %1339 }
 0xaac   :  { %v1149_v63 = vadd.f32 %v1147_v35, %v1139_v5  ;;  %v433_v47 = vadd.f32 %v2307_v6, %v423_v16  ;;  %v1342_v24 = vsel %vm289_vm0, %v2530_v2, 0.0 }
 0xaae   :  { %v1159_v44 = vadd.f32 %v1157_v50, %v1149_v63  ;;  %v443_v11 = vadd.f32 %v2311_v46, %v433_v47 }
 0xaaf   :  { %v1204_v48 = vpop.permute.xlu1 %1203 }
 0xab0   :  { %v1169_v26 = vadd.f32 %v1167_v55, %v1159_v44  ;;  %v444_v3 = vadd.f32 %v2394_v62, %v443_v11 }
 0xab2   :  { %v1179_v28 = vadd.f32 %v1177_v0, %v1169_v26  ;;  %v1196_v0 = vpop.xlane.xlu0 %1195 }
 0xab3   :  { %v1346_v9 = vpop.permute.xlu1 %1345  ;;  %v1233_v58 = vsel %vm341_vm1, %v2526_v29, %v1196_v0 }
 0xab4   :  { %1181 = vrot.lane.b32.xlu1 %v1179_v28, %s1800_s6  ;;  %v1348_v46 = vsel %vm289_vm0, %v1346_v9, 0.0 }
 0xab7   :  { %v1352_v21 = vpop.permute.xlu1 %1351 }
 0xab8   :  { %v1354_v43 = vsel %vm289_vm0, %v1352_v21, 0.0 }
 0xabb   :  { %v1358_v41 = vpop.permute.xlu1 %1357 }
 0xabc   :  { %v1360_v38 = vsel %vm289_vm0, %v1358_v41, 0.0 }
 0xabf   :  { %v1364_v1 = vpop.permute.xlu1 %1363  ;;  %1333 = vrot.lane.b32.xlu0 %v2020_v25, %s1785_s19 }
 0xac0   :  { %v1366_v8 = vsel %vm289_vm0, %v1364_v1, 0.0 }
 0xac3   :  { %v1370_v45 = vpop.permute.xlu1 %1369  ;;  %1209 = vrot.lane.b32.xlu0 %v2038_v37, %s1789_s0 }
 0xac7   :  { %v598_v22 = vpop.permute.xlu1 %597  ;;  %1215 = vrot.lane.b32.xlu0 %v2066_v53, %s1789_s0  ;;  %v1206_v53 = vsel %vm289_vm0, %v1204_v48, 0.0 }
 0xac8   :  { %v600_v56 = vadd.f32 %v2394_v62, %v598_v22 }
 0xaca   :  { %v1482_v6 = vsel %vm1481_vm9, %v444_v3, %v600_v56 }
 0xacb   :  { %v746_v7 = vpop.permute.xlu1 %745  ;;  %1221 = vrot.lane.b32.xlu0 %v2026_v32, %s1789_s0 }
 0xacc   :  { %v748_v25 = vadd.f32 %v2394_v62, %v746_v7 }
 0xace   :  { %v1483_v37 = vsel %vm289_vm0, %v1482_v6, %v748_v25 }
 0xacf   :  { %1227 = vrot.lane.b32.xlu0 %v2061_v52, %s1789_s0  ;;  %v1372_v52 = vsel %vm289_vm0, %v1370_v45, 0.0  ;;  %v894_v23 = vpop.permute.xlu1 %893 }
 0xad3   :  { %1375 = vrot.lane.b32.xlu0 %v2026_v32, %s1785_s19  ;;  %v896_v32 = vadd.f32 %v2394_v62, %v894_v23 }
 0xad5   :  { %v1485_v60 = vsel %vm1484_vm10, %v1483_v37, %v896_v32 }
 0xad6   :  { %v1487_v50 = vsel %vm1486_vm11, %v1485_v60, %v1028_v27 }
 0xad8   :  { %1207 = vadd.xlane.f32.xlu1 %v1206_v53 }
 0xadc   :  { %1349 = vadd.xlane.f32.xlu1 %v1348_v46 }
 0xae0   :  { %1355 = vadd.xlane.f32.xlu1 %v1354_v43 }
 0xae4   :  { %1361 = vadd.xlane.f32.xlu1 %v1360_v38 }
 0xae8   :  { %1367 = vadd.xlane.f32.xlu1 %v1366_v8  ;;  %v2726_v8 = vmov 2  }
 0xaec   :  { %1373 = vadd.xlane.f32.xlu1 %v1372_v52 }
 0xb26   :  { %v1182_v4 = vpop.permute.xlu1 %1181 }
 0xb27   :  { %v1184_v35 = vadd.f32 %v2394_v62, %v1182_v4 }
 0xb29   :  { %v2570_v55 = vsel %vm1488_vm12, %v1487_v50, %v1184_v35 }
 0xb32   :  { %v1202_v39 = vpop.xlane.xlu0 %1201 }
 0xb33   :  { %v1234_v57 = vsel %vm343_vm2, %v1233_v58, %v1202_v39 }
 0xb36   :  { %v1334_v13 = vpop.permute.xlu0 %1333 }
 0xb37   :  { %v1336_v40 = vsel %vm289_vm0, %v1334_v13, 0.0 }
 0xb38   :  { %1337 = vadd.xlane.f32.xlu0 %v1336_v40 }
 0xb3a   :  { %v1210_v42 = vpop.permute.xlu0 %1209 }
 0xb3b   :  { %v1212_v14 = vsel %vm289_vm0, %v1210_v42, 0.0 }
 0xb3c   :  { %1343 = vadd.xlane.f32.xlu0 %v1342_v24 }
 0xb3e   :  { %v1216_v17 = vpop.permute.xlu0 %1215 }
 0xb3f   :  { %v1218_v51 = vsel %vm289_vm0, %v1216_v17, 0.0 }
 0xb40   :  { %1213 = vadd.xlane.f32.xlu0 %v1212_v14 }
 0xb42   :  { %v1222_v20 = vpop.permute.xlu0 %1221 }
 0xb43   :  { %v1224_v61 = vsel %vm289_vm0, %v1222_v20, 0.0 }
 0xb44   :  { %1219 = vadd.xlane.f32.xlu0 %v1218_v51 }
 0xb46   :  { %v1228_v29 = vpop.permute.xlu0 %1227 }
 0xb47   :  { %v1230_v5 = vsel %vm289_vm0, %v1228_v29, 0.0 }
 0xb48   :  { %1225 = vadd.xlane.f32.xlu0 %v1224_v61 }
 0xb4a   :  { %v1376_v63 = vpop.permute.xlu0 %1375 }
 0xb4b   :  { %v1378_v44 = vsel %vm289_vm0, %v1376_v63, 0.0 }
 0xb4c   :  { %1231 = vadd.xlane.f32.xlu0 %v1230_v5 }
 0xb50   :  { %1379 = vadd.xlane.f32.xlu0 %v1378_v44 }
 0xb61   :  { %v1208_v54 = vpop.xlane.xlu1 %1207 }
 0xb62   :  { %v1235_v21 = vsel %vm345_vm3, %v1234_v57, %v1208_v54 }
 0xb65   :  { %v1350_v47 = vpop.xlane.xlu1 %1349 }
 0xb69   :  { %v1356_v45 = vpop.xlane.xlu1 %1355 }
 0xb6d   :  { %v1362_v11 = vpop.xlane.xlu1 %1361 }
 0xb71   :  { %v1368_v22 = vpop.xlane.xlu1 %1367 }
 0xb75   :  { %v1374_v56 = vpop.xlane.xlu1 %1373 }
 0xbc1   :  { %v1338_v2 = vpop.xlane.xlu0 %1337 }
 0xbc5   :  { %v1344_v48 = vpop.xlane.xlu0 %1343 }
 0xbc6   :  { %v1381_v26 = vsel %vm341_vm1, %v1338_v2, %v1344_v48 }
 0xbc7   :  { %v1382_v39 = vsel %vm343_vm2, %v1381_v26, %v1350_v47 }
 0xbc8   :  { %v1383_v57 = vsel %vm345_vm3, %v1382_v39, %v1356_v45 }
 0xbc9   :  { %v1214_v28 = vpop.xlane.xlu0 %1213  ;;  %v1384_v13 = vsel %vm347_vm4, %v1383_v57, %v1362_v11 }
 0xbca   :  { %v1236_v12 = vsel %vm347_vm4, %v1235_v21, %v1214_v28  ;;  %v1385_v40 = vsel %vm349_vm5, %v1384_v13, %v1368_v22 }
 0xbcb   :  { %v1386_v42 = vsel %vm351_vm6, %v1385_v40, %v1374_v56 }
 0xbcd   :  { %v1220_v9 = vpop.xlane.xlu0 %1219 }
 0xbce   :  { %v1237_v18 = vsel %vm349_vm5, %v1236_v12, %v1220_v9 }
 0xbd1   :  { %v1226_v19 = vpop.xlane.xlu0 %1225 }
 0xbd2   :  { %v1238_v41 = vsel %vm351_vm6, %v1237_v18, %v1226_v19 }
 0xbd5   :  { %v1232_v33 = vpop.xlane.xlu0 %1231 }
 0xbd6   :  { %v1239_v16 = vsel %vm353_vm7, %v1238_v41, %v1232_v33 }
 0xbd7   :  { %v1240_v1 = vsel %vm355_vm8, %v1239_v16, -inf }
 0xbd8   :  { %1241 = vmax.xlane.f32.xlu1 %v1240_v1 }
 0xbd9   :  { %v1380_v53 = vpop.xlane.xlu0 %1379 }
 0xbda   :  { %v1387_v24 = vsel %vm353_vm7, %v1386_v42, %v1380_v53 }
 0xbdb   :  { %v1388_v17 = vsel %vm355_vm8, %v1387_v24, -inf }
 0xc61   :  { %v1242_v3 = vpop.xlane.xlu1 %1241 }
 0xc62   :  { %v1243_v7 = vsub.f32 %v1239_v16, %v1242_v3 }
 0xc64   :  { %v1244_v25 = vmul.f32 1.442695, %v1243_v7 }
 0xc66   :  { %1666 = vpow2.f32 %v1244_v25 }
 0xc73   :  { %v1667_v6 = vpop.eup %1666 }
 0xc74   :  { %v1246_v37 = vsel %vm355_vm8, %v1667_v6, 0.0 }
 0xc75   :  { %1247 = vadd.xlane.f32.xlu0 %v1246_v37 }
 0xcfe   :  { %v1248_v46 = vpop.xlane.xlu0 %1247 }
 0xcff   :  { %1668 = vrcp.f32 %v1248_v46 }
 0xd0c   :  { %v1669_v43 = vpop.eup %1668 }
 0xd0d   :  { %v2591_v38 = vmul.f32 %v1669_v43, %v1667_v6 }
 0xd0f   :  { %1259 = vperm.xlu0 %1592, %v2591_v38   ;;  %1254 = vperm.xlu1 %1627, %v2591_v38  }
 0xd13   :  { %1628 = vset.pattern.permute.xlu1 %v2726_v8 }
 0xd8a   :  { %v1260_v52 = vpop.permute.xlu0 %1259  ;;  %v1255_v32 = vpop.permute.xlu1 %1254 }
 0xd8b   :  { %v1262_v23 = vmul.f32 %v2394_v62, %v1260_v52  ;;  %v1257_v14 = vmul.f32 %v2394_v62, %v1255_v32 }
 0xd8d   :  { %1264 = vrot.lane.b32.xlu1 %v1262_v23, %s1802_s8 }
 0xd91   :  { %1269 = vperm.xlu1 %1628, %v2591_v38  }
 0xd95   :  { %1629 = vset.pattern.permute.xlu1 %v2720_v49 }
 0xd96   :  { %1279 = vperm.xlu1 %1629, %v2591_v38  }
 0xd9a   :  { %1630 = vset.pattern.permute.xlu1 %v2721_v36 }
 0xd9b   :  { %1289 = vperm.xlu1 %1630, %v2591_v38  }
 0xd9f   :  { %1631 = vset.pattern.permute.xlu1 %v2722_v30 }
 0xdff   :  { %v1265_v60 = vpop.permute.xlu1 %1264 }
 0xe00   :  { %v1267_v20 = vadd.f32 %v1265_v60, %v1257_v14 }
 0xe0c   :  { %v1270_v27 = vpop.permute.xlu1 %1269 }
 0xe0d   :  { %v1272_v4 = vmul.f32 %v2394_v62, %v1270_v27 }
 0xe0f   :  { %1274 = vrot.lane.b32.xlu0 %v1272_v4, %s1790_s2 }
 0xe11   :  { %v1280_v35 = vpop.permute.xlu1 %1279 }
 0xe12   :  { %v1282_v50 = vmul.f32 %v2394_v62, %v1280_v35 }
 0xe14   :  { %1284 = vrot.lane.b32.xlu0 %v1282_v50, %s1800_s6 }
 0xe16   :  { %v1290_v0 = vpop.permute.xlu1 %1289 }
 0xe17   :  { %v1292_v58 = vmul.f32 %v2394_v62, %v1290_v0 }
 0xe19   :  { %1294 = vrot.lane.b32.xlu1 %v1292_v58, %s1789_s0 }
 0xe1d   :  { %1299 = vperm.xlu1 %1631, %v2591_v38  }
 0xe21   :  { %1632 = vset.pattern.permute.xlu1 %v2723_v59 }
 0xe33   :  { %1389 = vmax.xlane.f32.xlu0 %v1388_v17 }
 0xe81   :  { %v1275_v51 = vpop.permute.xlu0 %1274 }
 0xe82   :  { %v1277_v29 = vadd.f32 %v1275_v51, %v1267_v20  ;;  %v2728_v51 = vld [vmem:[#allocation17_spill] sm:$0xff] }
 0xe86   :  { %v1285_v61 = vpop.permute.xlu0 %1284 }
 0xe87   :  { %v1287_v5 = vadd.f32 %v1285_v61, %v1277_v29 }
 0xe8b   :  { %v1295_v63 = vpop.permute.xlu1 %1294 }
 0xe8c   :  { %v1297_v44 = vadd.f32 %v1295_v63, %v1287_v5 }
 0xe98   :  { %v1300_v2 = vpop.permute.xlu1 %1299 }
 0xe99   :  { %v1302_v48 = vmul.f32 %v2394_v62, %v1300_v2 }
 0xe9b   :  { %1304 = vrot.lane.b32.xlu1 %v1302_v48, %s1801_s7 }
 0xe9f   :  { %1309 = vperm.xlu1 %1632, %v2591_v38  }
 0xea3   :  { %1633 = vset.pattern.permute.xlu1 %v2724_v31 }
 0xebc   :  { %v1390_v26 = vpop.xlane.xlu0 %1389 }
 0xebd   :  { %v1391_v28 = vsub.f32 %v1387_v24, %v1390_v26 }
 0xebf   :  { %v1392_v9 = vmul.f32 1.442695, %v1391_v28 }
 0xec1   :  { %1670 = vpow2.f32 %v1392_v9 }
 0xece   :  { %v1671_v54 = vpop.eup %1670 }
 0xecf   :  { %v1394_v19 = vsel %vm355_vm8, %v1671_v54, 0.0 }
 0xed0   :  { %1395 = vadd.xlane.f32.xlu0 %v1394_v19 }
 0xf0d   :  { %v1305_v21 = vpop.permute.xlu1 %1304 }
 0xf0e   :  { %v1307_v12 = vadd.f32 %v1305_v21, %v1297_v44  ;;  %v2730_v44 = vld [vmem:[#allocation15_spill] sm:$0xff] }
 0xf1a   :  { %v1310_v18 = vpop.permute.xlu1 %1309 }
 0xf1b   :  { %v1312_v41 = vmul.f32 %v2394_v62, %v1310_v18 }
 0xf1d   :  { %1314 = vrot.lane.b32.xlu1 %v1312_v41, %s1785_s19 }
 0xf21   :  { %1319 = vperm.xlu1 %1633, %v2591_v38  }
 0xf25   :  { %1634 = vset.pattern.permute.xlu1 %v2725_v34 }
 0xf59   :  { %v1396_v33 = vpop.xlane.xlu0 %1395 }
 0xf5a   :  { %1672 = vrcp.f32 %v1396_v33 }
 0xf67   :  { %v1673_v16 = vpop.eup %1672 }
 0xf68   :  { %v2629_v1 = vmul.f32 %v1673_v16, %v1671_v54 }
 0xf6a   :  { %1407 = vperm.xlu0 %1592, %v2629_v1  }
 0xf6e   :  { %1637 = vset.pattern.permute.xlu0 %v2721_v36 }
 0xf6f   :  { %1437 = vperm.xlu0 %1637, %v2629_v1  }
 0xf73   :  { %1641 = vset.pattern.permute.xlu0 %v2724_v31 }
 0xf8f   :  { %v1315_v47 = vpop.permute.xlu1 %1314 }
 0xf90   :  { %v1317_v45 = vadd.f32 %v1315_v47, %v1307_v12 }
 0xf9c   :  { %v1320_v11 = vpop.permute.xlu1 %1319 }
 0xf9d   :  { %v1322_v22 = vmul.f32 %v2394_v62, %v1320_v11 }
 0xf9f   :  { %1324 = vrot.lane.b32.xlu1 %v1322_v22, %s1799_s5 }
 0xfe5   :  { %v1408_v3 = vpop.permute.xlu0 %1407 }
 0xfe6   :  { %v1410_v36 = vmul.f32 %v2394_v62, %v1408_v3 }
 0xfea   :  { %v1438_v60 = vpop.permute.xlu0 %1437 }
 0xfeb   :  { %v1440_v27 = vmul.f32 %v2394_v62, %v1438_v60 }
0x1011   :  { %v1325_v34 = vpop.permute.xlu1 %1324 }
0x1012   :  { %v1327_v56 = vadd.f32 %v1325_v34, %v1317_v45 }
0x1014   :  { %1329 = vrot.lane.b32.xlu1 %v1327_v56, %s1790_s2 }
0x1018   :  { %1402 = vperm.xlu1 %1634, %v2629_v1  }
0x101c   :  { %1412 = vrot.lane.b32.xlu1 %v1410_v36, %s1802_s8 }
0x101d   :  { %1635 = vset.pattern.permute.xlu1 %v2726_v8 }
0x1020   :  { %1417 = vperm.xlu1 %1635, %v2629_v1  }
0x1024   :  { %1636 = vset.pattern.permute.xlu1 %v2720_v49 }
0x1086   :  { %v1330_v7 = vpop.permute.xlu1 %1329 }
0x1087   :  { %v1332_v25 = vadd.f32 %v2394_v62, %v1330_v7 }
0x1089   :  { %v2646_v6 = vsel %vm1490_vm13, %v2570_v55, %v1332_v25 }
0x1093   :  { %v1403_v37 = vpop.permute.xlu1 %1402 }
0x1094   :  { %v1405_v53 = vmul.f32 %v2394_v62, %v1403_v37 }
0x1097   :  { %v1413_v46 = vpop.permute.xlu1 %1412 }
0x1098   :  { %v1415_v43 = vadd.f32 %v1413_v46, %v1405_v53 }
0x109b   :  { %v1418_v52 = vpop.permute.xlu1 %1417 }
0x109c   :  { %v1420_v23 = vmul.f32 %v2394_v62, %v1418_v52 }
0x109e   :  { %1422 = vrot.lane.b32.xlu1 %v1420_v23, %s1790_s2 }
0x10a2   :  { %1427 = vperm.xlu1 %1636, %v2629_v1  }
0x10a6   :  { %1638 = vset.pattern.permute.xlu1 %v2722_v30 }
0x1110   :  { %v1423_v49 = vpop.permute.xlu1 %1422 }
0x1111   :  { %v1425_v8 = vadd.f32 %v1423_v49, %v1415_v43 }
0x111d   :  { %v1428_v32 = vpop.permute.xlu1 %1427 }
0x111e   :  { %v1430_v55 = vmul.f32 %v2394_v62, %v1428_v32 }
0x1120   :  { %1432 = vrot.lane.b32.xlu1 %v1430_v55, %s1800_s6 }
0x1124   :  { %1442 = vrot.lane.b32.xlu1 %v1440_v27, %s1789_s0 }
0x1128   :  { %1447 = vperm.xlu1 %1638, %v2629_v1  }
0x112c   :  { %1639 = vset.pattern.permute.xlu1 %v2723_v59 }
0x112d   :  { %1457 = vperm.xlu1 %1639, %v2629_v1  }
0x1131   :  { %1640 = vset.pattern.permute.xlu1 %v2724_v31  ;;  %v2727_v31 = vld [vmem:[#allocation18_spill] sm:$0xff] }
0x1132   :  { %1467 = vperm.xlu1 %1640, %v2629_v1  }
0x1192   :  { %v1433_v30 = vpop.permute.xlu1 %1432 }
0x1193   :  { %v1435_v4 = vadd.f32 %v1433_v30, %v1425_v8 }
0x1196   :  { %v1443_v35 = vpop.permute.xlu1 %1442 }
0x1197   :  { %v1445_v50 = vadd.f32 %v1443_v35, %v1435_v4 }
0x11a3   :  { %v1448_v0 = vpop.permute.xlu1 %1447 }
0x11a4   :  { %v1450_v58 = vmul.f32 %v2394_v62, %v1448_v0 }
0x11a6   :  { %1452 = vrot.lane.b32.xlu0 %v1450_v58, %s1801_s7 }
0x11a8   :  { %v1458_v39 = vpop.permute.xlu1 %1457 }
0x11a9   :  { %v1460_v57 = vmul.f32 %v2394_v62, %v1458_v39 }
0x11ab   :  { %1462 = vrot.lane.b32.xlu0 %v1460_v57, %s1785_s19 }
0x11ad   :  { %v1468_v59 = vpop.permute.xlu1 %1467 }
0x11ae   :  { %v1470_v13 = vmul.f32 %v2394_v62, %v1468_v59 }
0x11b0   :  { %1472 = vrot.lane.b32.xlu0 %v1470_v13, %s1799_s5 }
0x11b4   :  { %1495 = vrot.lane.b32.xlu0 %v2201_v15, %s1803_s9  ;;  %v2729_v15 = vld [vmem:[#allocation16_spill] sm:$0xff] }
0x11b8   :  { %1501 = vrot.lane.b32.xlu0 %v2727_v31, %s1804_s10 }
0x11bc   :  { %1507 = vrot.lane.b32.xlu0 %v2390_v10, %s1805_s11 }
0x11c0   :  { %1513 = vrot.lane.b32.xlu0 %v2629_v1, %s1806_s12 }
0x1218   :  { %v1453_v40 = vpop.permute.xlu0 %1452 }
0x1219   :  { %v1455_v24 = vadd.f32 %v1453_v40, %v1445_v50 }
0x121d   :  { %v1463_v42 = vpop.permute.xlu0 %1462 }
0x121e   :  { %v1465_v17 = vadd.f32 %v1463_v42, %v1455_v24 }
0x1222   :  { %v1473_v14 = vpop.permute.xlu0 %1472 }
0x1223   :  { %v1475_v20 = vadd.f32 %v1473_v14, %v1465_v17 }
0x1225   :  { %1477 = vrot.lane.b32.xlu1 %v1475_v20, %s1802_s8 }
0x1226   :  { %v1496_v10 = vpop.permute.xlu0 %1495 }
0x1227   :  { %v1516_v2 = vsel %vm355_vm8, %v2730_v44, %v1496_v10 }
0x1229   :  { %1498 = vrot.lane.b32.xlu1 %v2728_v51, %s1799_s5 }
0x122a   :  { %v1502_v61 = vpop.permute.xlu0 %1501 }
0x122d   :  { %1504 = vrot.lane.b32.xlu1 %v2729_v15, %s1785_s19 }
0x1231   :  { %1510 = vrot.lane.b32.xlu1 %v2591_v38, %s1801_s7 }
0x1297   :  { %v1478_v29 = vpop.permute.xlu1 %1477 }
0x1298   :  { %v1480_v5 = vadd.f32 %v2394_v62, %v1478_v29 }
0x129a   :  { %v1493_v63 = vsel %vm1492_vm14, %v2646_v6, %v1480_v5 }
0x129b   :  { %v1499_v48 = vpop.permute.xlu1 %1498  ;;  %1494 = vst [vmem:[#allocation8] sm:$0xff] %v1493_v63 }
0x129c   :  { %v1517_v26 = vsel %vm1481_vm9, %v1516_v2, %v1499_v48 }
0x129d   :  { %1746 = shalt.err (!%p1743_p5)
}
0x129e   :  { %1536 = dma.vmem_to_hbm [thread:$0]  %s1534_s14, 128, %s2696_s3, [#allocation4]   ;;  %v1508_v62 = vpop.permute.xlu0 %1507  ;;  %v1519_v28 = vsel %vm1518_vm15, %v1517_v26, %v1502_v61  ;;  %vm1521_vm1 = vcmask 326656   ;;  %vm1524_vm2 = vcmask 457728  }
0x129f   :  { %v1505_v38 = vpop.permute.xlu1 %1504  ;;  %s1808_s18 = smov [#allocation9]  }
0x12a0   :  { %v1520_v9 = vsel %vm289_vm0, %v1519_v28, %v1505_v38  ;;  %s1543_s19 = sshll.u32 %s1808_s18, 4  ;;  %s1544_s19 = int_to_ptr.vmem [resolvable:$true] %s1543_s19 }
0x12a1   :  { %v1522_v19 = vsel %vm1521_vm1, %v1520_v9, %v1508_v62  ;;  %s1755_s20 = scalar_lea.vmem %s1544_s19, 128  ;;  %p1760_p7 = scmp.lt.s32.totalorder %s1544_s19, %s1544_s19 }
0x12a2   :  { %v1514_v21 = vpop.permute.xlu0 %1513  ;;  %p1756_p6 = scmp.ne.s32.totalorder %s1544_s19, %s1755_s20  ;;  %p1761_p8 = scmp.lt.s32.totalorder %s1755_s20, %s1755_s20 }
0x12a3   :  { %v1511_v54 = vpop.permute.xlu1 %1510 }
0x12a4   :  { %v1523_v12 = vsel %vm1484_vm10, %v1522_v19, %v1511_v54  ;;  %p1762_p9 = por %p1761_p8, %p1760_p7 }
0x12a5   :  { %v1525_v18 = vsel %vm1524_vm2, %v1523_v12, %v1514_v21 }
0x12a6   :  { %1526 = vst.msk [vmem:[#allocation9] sm:$0xff] %vm1486_vm11, %v1525_v18  ;;  %p1763_p10 = pnand %p1762_p9, %p1756_p6 }
0x12a8   :  { %1766 = shalt.err (!%p1763_p10)
}
0x12a9   :  { %1546 = dma.vmem_to_hbm [thread:$0]  %s1544_s19, 128, %s2697_s4, [#allocation10]  }
0x12aa   :  { %1779 = dma.done.wait [#allocation4], 128  }
0x12ab   :  { %1780 = vsyncadd [#allocation4], 4294967168 }
0x12ac   :  { %1781 = dma.done.wait [#allocation10], 128  }
0x12ad   :  { %1782 = vsyncadd [#allocation10], 4294967168 }
0x12ae   :  { %1553 = vsyncpa [#allocation3], 1 }
0x12af   :  { %1554 = vsyncpa [#allocation6], 1 }
0x12b0   :  { %1555 = vsyncpa [#allocation4], 1 }
0x12b1   :  { %1556 = vsyncpa [#allocation10], 1 }

</bundles_post_ra>
